<compile_context>
chip_gen: v6e
topology: v6e:2x2x1
jax: 0.10.0
libtpu: 0.0.40
codegen_flags: <defaults>
</compile_context>

<pallas_src>
import functools

import jax
import jax.numpy as jnp
from jax.experimental import pallas as pl
from jax.experimental.pallas import tpu as pltpu

KSIZE = 7
PAD = 3


def _round_up(v, m):
    return (v + m - 1) // m * m


def _spatial_attention_kernel(x_ref, colmask_ref, w_ref, o_ref, pad_ref,
                              *, W, OFF):
    # x_ref       : (B_TILE, C, HW)     VMEM  lane-dense image block
    # colmask_ref : (KSIZE, HW)         VMEM  f32 column-validity mask per kx
    # w_ref       : (2*KSIZE*KSIZE,)    SMEM  flattened conv weight [ci, ky, kx]
    # o_ref       : (B_TILE, C, HW)     VMEM  output block
    # pad_ref     : (2, B_TILE, L)      VMEM  row-padded flat [max ; mean] maps
    B_TILE, C, HW = x_ref.shape
    L = pad_ref.shape[-1]

    # Re-zero only the halo strips (tiny stores); the interior [OFF, OFF+HW)
    # is fully overwritten every step, so this stays correct even when the
    # parallel grid axis is sharded across TensorCores.
    pad_ref[:, :, 0:OFF] = jnp.zeros((2, B_TILE, OFF), jnp.float32)
    pad_ref[:, :, OFF + HW:L] = jnp.zeros((2, B_TILE, L - OFF - HW),
                                          jnp.float32)

    # ---- channel-wise max & mean for the whole batch tile (sublane reduce) --
    blk = x_ref[...].astype(jnp.float32)                 # (B_TILE, C, HW)
    mx = jnp.max(blk, axis=1)                            # (B_TILE, HW)
    mean = jnp.sum(blk, axis=1) * (1.0 / C)              # (B_TILE, HW)

    # ---- stage [max ; mean] into the flat scratch (lane-aligned stores) -----
    pad_ref[0:1, :, OFF:OFF + HW] = mx[None, :, :]
    pad_ref[1:2, :, OFF:OFF + HW] = mean[None, :, :]

    # ---- 7x7 conv (2 -> 1 channels, no bias), flattened spatial domain ------
    # tap (ci, ky, kx) reads the scratch at flat offset (ky-3)*W + (kx-3);
    # cross-row bleed from the kx shift is removed once per kx group via
    # colmask.  All B_TILE images and both input channels share each shift.
    acc = jnp.zeros((B_TILE, HW), jnp.float32)
    for kx in range(KSIZE):
        d = kx - PAD
        p0 = jnp.zeros((B_TILE, HW), jnp.float32)
        p1 = jnp.zeros((B_TILE, HW), jnp.float32)
        for ky in range(KSIZE):
            off = OFF + (ky - PAD) * W + d
            slab = pad_ref[:, :, off:off + HW]           # (2, B_TILE, HW)
            w_max = w_ref[ky * KSIZE + kx]
            w_mean = w_ref[KSIZE * KSIZE + ky * KSIZE + kx]
            tap = w_max * slab[0] + w_mean * slab[1]
            if ky % 2 == 0:
                p0 = p0 + tap
            else:
                p1 = p1 + tap
        acc = acc + colmask_ref[kx:kx + 1, :] * (p0 + p1)

    # ---- epilogue: out = x * (1 + sigmoid(conv)) -----------------------------
    scale = 1.0 + jax.nn.sigmoid(acc)                    # (B_TILE, HW) f32
    xf = x_ref[...].astype(jnp.float32)                  # (B_TILE, C, HW)
    o_ref[...] = (xf * scale[:, None, :]).astype(o_ref.dtype)


def spatial_attention(x, w, *, b_tile=None):
    """x: (N, C, H, W), w: (1, 2, 7, 7) float32 (OIHW, no bias)."""
    N, C, H, W = x.shape
    HW = H * W
    w_flat = w.reshape(-1).astype(jnp.float32)           # (98,) -> SMEM

    # Column-validity masks: colmask[kx, p] = 1 iff 0 <= (p % W) + kx - 3 < W.
    col = jnp.arange(HW, dtype=jnp.int32) % W
    dx = jnp.arange(KSIZE, dtype=jnp.int32) - PAD
    shifted = col[None, :] + dx[:, None]
    colmask = ((shifted >= 0) & (shifted < W)).astype(jnp.float32)  # (7, HW)

    # Flat conv scratch: interior at lane-aligned offset OFF, with >= 3*W+3
    # zero entries on each side (row halo for the ky shifts).
    OFF = _round_up(PAD * W + PAD, 128)
    L = _round_up(OFF + HW + PAD * W + PAD, 128)

    # Batch up to 8 images per grid step (sublane-batched conv) within a
    # ~2 MiB per-block budget (safe on v7x's 64 MiB VMEM); keep >= 2 grid
    # steps for large N so both v7x TensorCores get work.
    if b_tile is None:
        per_img = C * HW * x.dtype.itemsize
        budget = 2 * 1024 * 1024
        b_tile = max(1, min(N, 8, budget // max(per_img, 1)))
        if N >= 8 and N // b_tile < 2:
            b_tile = N // 2
        while N % b_tile:
            b_tile -= 1

    kernel = functools.partial(_spatial_attention_kernel, W=W, OFF=OFF)

    # VMEM budget derived from actual usage (double-buffered in/out blocks +
    # scratch + colmask) plus headroom for in-kernel f32 temporaries.
    blk_bytes = b_tile * C * HW * x.dtype.itemsize
    scratch_bytes = 2 * b_tile * L * 4
    colmask_bytes = KSIZE * HW * 4
    vmem_limit = 4 * blk_bytes + scratch_bytes + 2 * colmask_bytes + (8 << 20)
    vmem_limit = int(min(max(vmem_limit, 16 << 20), 48 << 20))

    out = pl.pallas_call(
        kernel,
        out_shape=jax.ShapeDtypeStruct((N, C, HW), x.dtype),
        grid_spec=pltpu.PrefetchScalarGridSpec(
            num_scalar_prefetch=0,
            grid=(N // b_tile,),
            in_specs=[
                pl.BlockSpec((b_tile, C, HW), lambda n: (n, 0, 0)),
                pl.BlockSpec((KSIZE, HW), lambda n: (0, 0)),
                pl.BlockSpec(memory_space=pltpu.MemorySpace.SMEM),
            ],
            out_specs=pl.BlockSpec((b_tile, C, HW), lambda n: (n, 0, 0)),
            scratch_shapes=[pltpu.VMEM((2, b_tile, L), jnp.float32)],
        ),
        compiler_params=pltpu.CompilerParams(
            dimension_semantics=("parallel",),
            vmem_limit_bytes=vmem_limit,
        ),
    )(x.reshape(N, C, HW), colmask, w_flat)

    return out.reshape(N, C, H, W)


def _reference(x, w):
    """Pure-JAX reference matching the PyTorch forward exactly."""
    xf = x.astype(jnp.float32)
    mx = jnp.max(xf, axis=1, keepdims=True)
    mn = jnp.mean(xf, axis=1, keepdims=True)
    att_in = jnp.concatenate([mx, mn], axis=1)            # (N, 2, H, W)
    conv = jax.lax.conv_general_dilated(
        att_in, w, window_strides=(1, 1),
        padding=((PAD, PAD), (PAD, PAD)),
        dimension_numbers=("NCHW", "OIHW", "NCHW"))
    att = jax.nn.sigmoid(conv)                            # (N, 1, H, W)
    return xf + xf * att


if __name__ == "__main__":
    N, C, H, W = 2, 4, 16, 16
    key = jax.random.PRNGKey(0)
    kx, kw = jax.random.split(key)

    x = jax.random.normal(kx, (N, C, H, W), dtype=jnp.float32)

    # Deterministic Conv2d(2, 1, 7, padding=3, bias=False) weight init
    # (PyTorch-style kaiming_uniform bound = 1/sqrt(fan_in) = 1/sqrt(2*7*7)).
    bound = 1.0 / jnp.sqrt(2.0 * KSIZE * KSIZE)
    w = jax.random.uniform(kw, (1, 2, KSIZE, KSIZE),
                           minval=-bound, maxval=bound, dtype=jnp.float32)

    out = spatial_attention(x, w)
    out = jax.block_until_ready(out)

    ref = _reference(x, w)
    assert out.shape == ref.shape and out.dtype == ref.dtype
    assert jnp.allclose(out, ref, atol=1e-5, rtol=1e-5), \
        f"max abs err = {jnp.max(jnp.abs(out - ref))}"

    print("KERNEL_OK")
</pallas_src>

<mosaic_0001>
module attributes {stable_mosaic.version = 11 : i64} {
  func.func @_spatial_attention_kernel(%arg0: i32, %arg1: memref<2x4x256xf32, #tpu.memory_space<vmem>>, %arg2: memref<7x256xf32, #tpu.memory_space<vmem>>, %arg3: memref<98xf32, #tpu.memory_space<smem>>, %arg4: memref<2x4x256xf32, #tpu.memory_space<vmem>>, %arg5: memref<2x2x512xf32, #tpu.memory_space<vmem>>) attributes {dimension_semantics = [#tpu.dimension_semantics<parallel>], iteration_bounds = array<i64: 1>, scalar_prefetch = 0 : i64, scratch_operands = 1 : i64, tpu.core_type = #tpu.core_type<tc>, window_params = [{transform_indices = @transform_0, window_bounds = array<i64: 2, 4, 256>}, {pipeline_mode = #tpu.pipeline_mode<synchronous>, transform_indices = @transform_1, window_bounds = array<i64: 7, 256>}, {transform_indices = @transform_2, window_bounds = array<i64: 98>}, {transform_indices = @transform_3, window_bounds = array<i64: 2, 4, 256>}]} {
    %cst = arith.constant 0.000000e+00 : f32
    %0 = vector.broadcast %cst : f32 to vector<2x2x128xf32>
    %c0 = arith.constant 0 : index
    %c0_0 = arith.constant 0 : index
    %c0_1 = arith.constant 0 : index
    %1 = vector.load %arg5[%c0, %c0_0, %c0_1] : memref<2x2x512xf32, #tpu.memory_space<vmem>>, vector<2x2x128xf32>
    tpu.vector_store %arg5[%c0, %c0_0, %c0_1], %0 {strides = array<i32>} : memref<2x2x512xf32, #tpu.memory_space<vmem>>, vector<2x2x128xf32>,
    %cst_2 = arith.constant 0.000000e+00 : f32
    %2 = vector.broadcast %cst_2 : f32 to vector<2x2x128xf32>
    %c0_3 = arith.constant 0 : index
    %c0_4 = arith.constant 0 : index
    %c384 = arith.constant 384 : index
    %3 = vector.load %arg5[%c0_3, %c0_4, %c384] : memref<2x2x512xf32, #tpu.memory_space<vmem>>, vector<2x2x128xf32>
    tpu.vector_store %arg5[%c0_3, %c0_4, %c384], %2 {strides = array<i32>} : memref<2x2x512xf32, #tpu.memory_space<vmem>>, vector<2x2x128xf32>,
    %c0_5 = arith.constant 0 : index
    %c0_6 = arith.constant 0 : index
    %c0_7 = arith.constant 0 : index
    %4 = vector.load %arg1[%c0_5, %c0_6, %c0_7] : memref<2x4x256xf32, #tpu.memory_space<vmem>>, vector<2x4x256xf32>
    %cst_8 = arith.constant dense<0xFF800000> : vector<2x256xf32>
    %5 = vector.multi_reduction <maximumf>, %4, %cst_8 [1] : vector<2x4x256xf32> to vector<2x256xf32>
    %cst_9 = arith.constant dense<0.000000e+00> : vector<2x256xf32>
    %6 = vector.multi_reduction <add>, %4, %cst_9 [1] : vector<2x4x256xf32> to vector<2x256xf32>
    %cst_10 = arith.constant 2.500000e-01 : f32
    %7 = vector.broadcast %cst_10 : f32 to vector<2x256xf32>
    %8 = arith.mulf %6, %7 : vector<2x256xf32>
    %9 = vector.shape_cast %5 : vector<2x256xf32> to vector<1x2x256xf32>
    %c0_11 = arith.constant 0 : index
    %c0_12 = arith.constant 0 : index
    %c128 = arith.constant 128 : index
    %10 = vector.load %arg5[%c0_11, %c0_12, %c128] : memref<2x2x512xf32, #tpu.memory_space<vmem>>, vector<1x2x256xf32>
    tpu.vector_store %arg5[%c0_11, %c0_12, %c128], %9 {strides = array<i32>} : memref<2x2x512xf32, #tpu.memory_space<vmem>>, vector<1x2x256xf32>,
    %11 = vector.shape_cast %8 : vector<2x256xf32> to vector<1x2x256xf32>
    %c1 = arith.constant 1 : index
    %c0_13 = arith.constant 0 : index
    %c128_14 = arith.constant 128 : index
    %12 = vector.load %arg5[%c1, %c0_13, %c128_14] : memref<2x2x512xf32, #tpu.memory_space<vmem>>, vector<1x2x256xf32>
    tpu.vector_store %arg5[%c1, %c0_13, %c128_14], %11 {strides = array<i32>} : memref<2x2x512xf32, #tpu.memory_space<vmem>>, vector<1x2x256xf32>,
    %cst_15 = arith.constant 0.000000e+00 : f32
    %13 = vector.broadcast %cst_15 : f32 to vector<2x256xf32>
    %cst_16 = arith.constant 0.000000e+00 : f32
    %14 = vector.broadcast %cst_16 : f32 to vector<2x256xf32>
    %cst_17 = arith.constant 0.000000e+00 : f32
    %15 = vector.broadcast %cst_17 : f32 to vector<2x256xf32>
    %c0_18 = arith.constant 0 : index
    %c0_19 = arith.constant 0 : index
    %c77 = arith.constant 77 : index
    %16 = vector.load %arg5[%c0_18, %c0_19, %c77] : memref<2x2x512xf32, #tpu.memory_space<vmem>>, vector<2x2x256xf32>
    %c0_20 = arith.constant 0 : index
    %17 = memref.load %arg3[%c0_20] : memref<98xf32, #tpu.memory_space<smem>>
    %c49 = arith.constant 49 : index
    %18 = memref.load %arg3[%c49] : memref<98xf32, #tpu.memory_space<smem>>
    %19 = vector.extract_strided_slice %16 {offsets = [0, 0, 0], sizes = [1, 2, 256], strides = [1, 1, 1]} : vector<2x2x256xf32> to vector<1x2x256xf32>
    %20 = vector.shape_cast %19 : vector<1x2x256xf32> to vector<2x256xf32>
    %21 = vector.broadcast %17 : f32 to vector<2x256xf32>
    %22 = arith.mulf %21, %20 : vector<2x256xf32>
    %23 = vector.extract_strided_slice %16 {offsets = [1, 0, 0], sizes = [1, 2, 256], strides = [1, 1, 1]} : vector<2x2x256xf32> to vector<1x2x256xf32>
    %24 = vector.shape_cast %23 : vector<1x2x256xf32> to vector<2x256xf32>
    %25 = vector.broadcast %18 : f32 to vector<2x256xf32>
    %26 = arith.mulf %25, %24 : vector<2x256xf32>
    %27 = arith.addf %22, %26 : vector<2x256xf32>
    %28 = arith.addf %14, %27 : vector<2x256xf32>
    %c0_21 = arith.constant 0 : index
    %c0_22 = arith.constant 0 : index
    %c93 = arith.constant 93 : index
    %29 = vector.load %arg5[%c0_21, %c0_22, %c93] : memref<2x2x512xf32, #tpu.memory_space<vmem>>, vector<2x2x256xf32>
    %c7 = arith.constant 7 : index
    %30 = memref.load %arg3[%c7] : memref<98xf32, #tpu.memory_space<smem>>
    %c56 = arith.constant 56 : index
    %31 = memref.load %arg3[%c56] : memref<98xf32, #tpu.memory_space<smem>>
    %32 = vector.extract_strided_slice %29 {offsets = [0, 0, 0], sizes = [1, 2, 256], strides = [1, 1, 1]} : vector<2x2x256xf32> to vector<1x2x256xf32>
    %33 = vector.shape_cast %32 : vector<1x2x256xf32> to vector<2x256xf32>
    %34 = vector.broadcast %30 : f32 to vector<2x256xf32>
    %35 = arith.mulf %34, %33 : vector<2x256xf32>
    %36 = vector.extract_strided_slice %29 {offsets = [1, 0, 0], sizes = [1, 2, 256], strides = [1, 1, 1]} : vector<2x2x256xf32> to vector<1x2x256xf32>
    %37 = vector.shape_cast %36 : vector<1x2x256xf32> to vector<2x256xf32>
    %38 = vector.broadcast %31 : f32 to vector<2x256xf32>
    %39 = arith.mulf %38, %37 : vector<2x256xf32>
    %40 = arith.addf %35, %39 : vector<2x256xf32>
    %41 = arith.addf %15, %40 : vector<2x256xf32>
    %c0_23 = arith.constant 0 : index
    %c0_24 = arith.constant 0 : index
    %c109 = arith.constant 109 : index
    %42 = vector.load %arg5[%c0_23, %c0_24, %c109] : memref<2x2x512xf32, #tpu.memory_space<vmem>>, vector<2x2x256xf32>
    %c14 = arith.constant 14 : index
    %43 = memref.load %arg3[%c14] : memref<98xf32, #tpu.memory_space<smem>>
    %c63 = arith.constant 63 : index
    %44 = memref.load %arg3[%c63] : memref<98xf32, #tpu.memory_space<smem>>
    %45 = vector.extract_strided_slice %42 {offsets = [0, 0, 0], sizes = [1, 2, 256], strides = [1, 1, 1]} : vector<2x2x256xf32> to vector<1x2x256xf32>
    %46 = vector.shape_cast %45 : vector<1x2x256xf32> to vector<2x256xf32>
    %47 = vector.broadcast %43 : f32 to vector<2x256xf32>
    %48 = arith.mulf %47, %46 : vector<2x256xf32>
    %49 = vector.extract_strided_slice %42 {offsets = [1, 0, 0], sizes = [1, 2, 256], strides = [1, 1, 1]} : vector<2x2x256xf32> to vector<1x2x256xf32>
    %50 = vector.shape_cast %49 : vector<1x2x256xf32> to vector<2x256xf32>
    %51 = vector.broadcast %44 : f32 to vector<2x256xf32>
    %52 = arith.mulf %51, %50 : vector<2x256xf32>
    %53 = arith.addf %48, %52 : vector<2x256xf32>
    %54 = arith.addf %28, %53 : vector<2x256xf32>
    %c0_25 = arith.constant 0 : index
    %c0_26 = arith.constant 0 : index
    %c125 = arith.constant 125 : index
    %55 = vector.load %arg5[%c0_25, %c0_26, %c125] : memref<2x2x512xf32, #tpu.memory_space<vmem>>, vector<2x2x256xf32>
    %c21 = arith.constant 21 : index
    %56 = memref.load %arg3[%c21] : memref<98xf32, #tpu.memory_space<smem>>
    %c70 = arith.constant 70 : index
    %57 = memref.load %arg3[%c70] : memref<98xf32, #tpu.memory_space<smem>>
    %58 = vector.extract_strided_slice %55 {offsets = [0, 0, 0], sizes = [1, 2, 256], strides = [1, 1, 1]} : vector<2x2x256xf32> to vector<1x2x256xf32>
    %59 = vector.shape_cast %58 : vector<1x2x256xf32> to vector<2x256xf32>
    %60 = vector.broadcast %56 : f32 to vector<2x256xf32>
    %61 = arith.mulf %60, %59 : vector<2x256xf32>
    %62 = vector.extract_strided_slice %55 {offsets = [1, 0, 0], sizes = [1, 2, 256], strides = [1, 1, 1]} : vector<2x2x256xf32> to vector<1x2x256xf32>
    %63 = vector.shape_cast %62 : vector<1x2x256xf32> to vector<2x256xf32>
    %64 = vector.broadcast %57 : f32 to vector<2x256xf32>
    %65 = arith.mulf %64, %63 : vector<2x256xf32>
    %66 = arith.addf %61, %65 : vector<2x256xf32>
    %67 = arith.addf %41, %66 : vector<2x256xf32>
    %c0_27 = arith.constant 0 : index
    %c0_28 = arith.constant 0 : index
    %c141 = arith.constant 141 : index
    %68 = vector.load %arg5[%c0_27, %c0_28, %c141] : memref<2x2x512xf32, #tpu.memory_space<vmem>>, vector<2x2x256xf32>
    %c28 = arith.constant 28 : index
    %69 = memref.load %arg3[%c28] : memref<98xf32, #tpu.memory_space<smem>>
    %c77_29 = arith.constant 77 : index
    %70 = memref.load %arg3[%c77_29] : memref<98xf32, #tpu.memory_space<smem>>
    %71 = vector.extract_strided_slice %68 {offsets = [0, 0, 0], sizes = [1, 2, 256], strides = [1, 1, 1]} : vector<2x2x256xf32> to vector<1x2x256xf32>
    %72 = vector.shape_cast %71 : vector<1x2x256xf32> to vector<2x256xf32>
    %73 = vector.broadcast %69 : f32 to vector<2x256xf32>
    %74 = arith.mulf %73, %72 : vector<2x256xf32>
    %75 = vector.extract_strided_slice %68 {offsets = [1, 0, 0], sizes = [1, 2, 256], strides = [1, 1, 1]} : vector<2x2x256xf32> to vector<1x2x256xf32>
    %76 = vector.shape_cast %75 : vector<1x2x256xf32> to vector<2x256xf32>
    %77 = vector.broadcast %70 : f32 to vector<2x256xf32>
    %78 = arith.mulf %77, %76 : vector<2x256xf32>
    %79 = arith.addf %74, %78 : vector<2x256xf32>
    %80 = arith.addf %54, %79 : vector<2x256xf32>
    %c0_30 = arith.constant 0 : index
    %c0_31 = arith.constant 0 : index
    %c157 = arith.constant 157 : index
    %81 = vector.load %arg5[%c0_30, %c0_31, %c157] : memref<2x2x512xf32, #tpu.memory_space<vmem>>, vector<2x2x256xf32>
    %c35 = arith.constant 35 : index
    %82 = memref.load %arg3[%c35] : memref<98xf32, #tpu.memory_space<smem>>
    %c84 = arith.constant 84 : index
    %83 = memref.load %arg3[%c84] : memref<98xf32, #tpu.memory_space<smem>>
    %84 = vector.extract_strided_slice %81 {offsets = [0, 0, 0], sizes = [1, 2, 256], strides = [1, 1, 1]} : vector<2x2x256xf32> to vector<1x2x256xf32>
    %85 = vector.shape_cast %84 : vector<1x2x256xf32> to vector<2x256xf32>
    %86 = vector.broadcast %82 : f32 to vector<2x256xf32>
    %87 = arith.mulf %86, %85 : vector<2x256xf32>
    %88 = vector.extract_strided_slice %81 {offsets = [1, 0, 0], sizes = [1, 2, 256], strides = [1, 1, 1]} : vector<2x2x256xf32> to vector<1x2x256xf32>
    %89 = vector.shape_cast %88 : vector<1x2x256xf32> to vector<2x256xf32>
    %90 = vector.broadcast %83 : f32 to vector<2x256xf32>
    %91 = arith.mulf %90, %89 : vector<2x256xf32>
    %92 = arith.addf %87, %91 : vector<2x256xf32>
    %93 = arith.addf %67, %92 : vector<2x256xf32>
    %c0_32 = arith.constant 0 : index
    %c0_33 = arith.constant 0 : index
    %c173 = arith.constant 173 : index
    %94 = vector.load %arg5[%c0_32, %c0_33, %c173] : memref<2x2x512xf32, #tpu.memory_space<vmem>>, vector<2x2x256xf32>
    %c42 = arith.constant 42 : index
    %95 = memref.load %arg3[%c42] : memref<98xf32, #tpu.memory_space<smem>>
    %c91 = arith.constant 91 : index
    %96 = memref.load %arg3[%c91] : memref<98xf32, #tpu.memory_space<smem>>
    %97 = vector.extract_strided_slice %94 {offsets = [0, 0, 0], sizes = [1, 2, 256], strides = [1, 1, 1]} : vector<2x2x256xf32> to vector<1x2x256xf32>
    %98 = vector.shape_cast %97 : vector<1x2x256xf32> to vector<2x256xf32>
    %99 = vector.broadcast %95 : f32 to vector<2x256xf32>
    %100 = arith.mulf %99, %98 : vector<2x256xf32>
    %101 = vector.extract_strided_slice %94 {offsets = [1, 0, 0], sizes = [1, 2, 256], strides = [1, 1, 1]} : vector<2x2x256xf32> to vector<1x2x256xf32>
    %102 = vector.shape_cast %101 : vector<1x2x256xf32> to vector<2x256xf32>
    %103 = vector.broadcast %96 : f32 to vector<2x256xf32>
    %104 = arith.mulf %103, %102 : vector<2x256xf32>
    %105 = arith.addf %100, %104 : vector<2x256xf32>
    %106 = arith.addf %80, %105 : vector<2x256xf32>
    %c0_34 = arith.constant 0 : index
    %c0_35 = arith.constant 0 : index
    %107 = vector.load %arg2[%c0_34, %c0_35] : memref<7x256xf32, #tpu.memory_space<vmem>>, vector<1x256xf32>
    %108 = arith.addf %106, %93 : vector<2x256xf32>
    %109 = vector.broadcast %107 : vector<1x256xf32> to vector<2x256xf32>
    %110 = arith.mulf %109, %108 : vector<2x256xf32>
    %111 = arith.addf %13, %110 : vector<2x256xf32>
    %cst_36 = arith.constant 0.000000e+00 : f32
    %112 = vector.broadcast %cst_36 : f32 to vector<2x256xf32>
    %cst_37 = arith.constant 0.000000e+00 : f32
    %113 = vector.broadcast %cst_37 : f32 to vector<2x256xf32>
    %c0_38 = arith.constant 0 : index
    %c0_39 = arith.constant 0 : index
    %c78 = arith.constant 78 : index
    %114 = vector.load %arg5[%c0_38, %c0_39, %c78] : memref<2x2x512xf32, #tpu.memory_space<vmem>>, vector<2x2x256xf32>
    %c1_40 = arith.constant 1 : index
    %115 = memref.load %arg3[%c1_40] : memref<98xf32, #tpu.memory_space<smem>>
    %c50 = arith.constant 50 : index
    %116 = memref.load %arg3[%c50] : memref<98xf32, #tpu.memory_space<smem>>
    %117 = vector.extract_strided_slice %114 {offsets = [0, 0, 0], sizes = [1, 2, 256], strides = [1, 1, 1]} : vector<2x2x256xf32> to vector<1x2x256xf32>
    %118 = vector.shape_cast %117 : vector<1x2x256xf32> to vector<2x256xf32>
    %119 = vector.broadcast %115 : f32 to vector<2x256xf32>
    %120 = arith.mulf %119, %118 : vector<2x256xf32>
    %121 = vector.extract_strided_slice %114 {offsets = [1, 0, 0], sizes = [1, 2, 256], strides = [1, 1, 1]} : vector<2x2x256xf32> to vector<1x2x256xf32>
    %122 = vector.shape_cast %121 : vector<1x2x256xf32> to vector<2x256xf32>
    %123 = vector.broadcast %116 : f32 to vector<2x256xf32>
    %124 = arith.mulf %123, %122 : vector<2x256xf32>
    %125 = arith.addf %120, %124 : vector<2x256xf32>
    %126 = arith.addf %112, %125 : vector<2x256xf32>
    %c0_41 = arith.constant 0 : index
    %c0_42 = arith.constant 0 : index
    %c94 = arith.constant 94 : index
    %127 = vector.load %arg5[%c0_41, %c0_42, %c94] : memref<2x2x512xf32, #tpu.memory_space<vmem>>, vector<2x2x256xf32>
    %c8 = arith.constant 8 : index
    %128 = memref.load %arg3[%c8] : memref<98xf32, #tpu.memory_space<smem>>
    %c57 = arith.constant 57 : index
    %129 = memref.load %arg3[%c57] : memref<98xf32, #tpu.memory_space<smem>>
    %130 = vector.extract_strided_slice %127 {offsets = [0, 0, 0], sizes = [1, 2, 256], strides = [1, 1, 1]} : vector<2x2x256xf32> to vector<1x2x256xf32>
    %131 = vector.shape_cast %130 : vector<1x2x256xf32> to vector<2x256xf32>
    %132 = vector.broadcast %128 : f32 to vector<2x256xf32>
    %133 = arith.mulf %132, %131 : vector<2x256xf32>
    %134 = vector.extract_strided_slice %127 {offsets = [1, 0, 0], sizes = [1, 2, 256], strides = [1, 1, 1]} : vector<2x2x256xf32> to vector<1x2x256xf32>
    %135 = vector.shape_cast %134 : vector<1x2x256xf32> to vector<2x256xf32>
    %136 = vector.broadcast %129 : f32 to vector<2x256xf32>
    %137 = arith.mulf %136, %135 : vector<2x256xf32>
    %138 = arith.addf %133, %137 : vector<2x256xf32>
    %139 = arith.addf %113, %138 : vector<2x256xf32>
    %c0_43 = arith.constant 0 : index
    %c0_44 = arith.constant 0 : index
    %c110 = arith.constant 110 : index
    %140 = vector.load %arg5[%c0_43, %c0_44, %c110] : memref<2x2x512xf32, #tpu.memory_space<vmem>>, vector<2x2x256xf32>
    %c15 = arith.constant 15 : index
    %141 = memref.load %arg3[%c15] : memref<98xf32, #tpu.memory_space<smem>>
    %c64 = arith.constant 64 : index
    %142 = memref.load %arg3[%c64] : memref<98xf32, #tpu.memory_space<smem>>
    %143 = vector.extract_strided_slice %140 {offsets = [0, 0, 0], sizes = [1, 2, 256], strides = [1, 1, 1]} : vector<2x2x256xf32> to vector<1x2x256xf32>
    %144 = vector.shape_cast %143 : vector<1x2x256xf32> to vector<2x256xf32>
    %145 = vector.broadcast %141 : f32 to vector<2x256xf32>
    %146 = arith.mulf %145, %144 : vector<2x256xf32>
    %147 = vector.extract_strided_slice %140 {offsets = [1, 0, 0], sizes = [1, 2, 256], strides = [1, 1, 1]} : vector<2x2x256xf32> to vector<1x2x256xf32>
    %148 = vector.shape_cast %147 : vector<1x2x256xf32> to vector<2x256xf32>
    %149 = vector.broadcast %142 : f32 to vector<2x256xf32>
    %150 = arith.mulf %149, %148 : vector<2x256xf32>
    %151 = arith.addf %146, %150 : vector<2x256xf32>
    %152 = arith.addf %126, %151 : vector<2x256xf32>
    %c0_45 = arith.constant 0 : index
    %c0_46 = arith.constant 0 : index
    %c126 = arith.constant 126 : index
    %153 = vector.load %arg5[%c0_45, %c0_46, %c126] : memref<2x2x512xf32, #tpu.memory_space<vmem>>, vector<2x2x256xf32>
    %c22 = arith.constant 22 : index
    %154 = memref.load %arg3[%c22] : memref<98xf32, #tpu.memory_space<smem>>
    %c71 = arith.constant 71 : index
    %155 = memref.load %arg3[%c71] : memref<98xf32, #tpu.memory_space<smem>>
    %156 = vector.extract_strided_slice %153 {offsets = [0, 0, 0], sizes = [1, 2, 256], strides = [1, 1, 1]} : vector<2x2x256xf32> to vector<1x2x256xf32>
    %157 = vector.shape_cast %156 : vector<1x2x256xf32> to vector<2x256xf32>
    %158 = vector.broadcast %154 : f32 to vector<2x256xf32>
    %159 = arith.mulf %158, %157 : vector<2x256xf32>
    %160 = vector.extract_strided_slice %153 {offsets = [1, 0, 0], sizes = [1, 2, 256], strides = [1, 1, 1]} : vector<2x2x256xf32> to vector<1x2x256xf32>
    %161 = vector.shape_cast %160 : vector<1x2x256xf32> to vector<2x256xf32>
    %162 = vector.broadcast %155 : f32 to vector<2x256xf32>
    %163 = arith.mulf %162, %161 : vector<2x256xf32>
    %164 = arith.addf %159, %163 : vector<2x256xf32>
    %165 = arith.addf %139, %164 : vector<2x256xf32>
    %c0_47 = arith.constant 0 : index
    %c0_48 = arith.constant 0 : index
    %c142 = arith.constant 142 : index
    %166 = vector.load %arg5[%c0_47, %c0_48, %c142] : memref<2x2x512xf32, #tpu.memory_space<vmem>>, vector<2x2x256xf32>
    %c29 = arith.constant 29 : index
    %167 = memref.load %arg3[%c29] : memref<98xf32, #tpu.memory_space<smem>>
    %c78_49 = arith.constant 78 : index
    %168 = memref.load %arg3[%c78_49] : memref<98xf32, #tpu.memory_space<smem>>
    %169 = vector.extract_strided_slice %166 {offsets = [0, 0, 0], sizes = [1, 2, 256], strides = [1, 1, 1]} : vector<2x2x256xf32> to vector<1x2x256xf32>
    %170 = vector.shape_cast %169 : vector<1x2x256xf32> to vector<2x256xf32>
    %171 = vector.broadcast %167 : f32 to vector<2x256xf32>
    %172 = arith.mulf %171, %170 : vector<2x256xf32>
    %173 = vector.extract_strided_slice %166 {offsets = [1, 0, 0], sizes = [1, 2, 256], strides = [1, 1, 1]} : vector<2x2x256xf32> to vector<1x2x256xf32>
    %174 = vector.shape_cast %173 : vector<1x2x256xf32> to vector<2x256xf32>
    %175 = vector.broadcast %168 : f32 to vector<2x256xf32>
    %176 = arith.mulf %175, %174 : vector<2x256xf32>
    %177 = arith.addf %172, %176 : vector<2x256xf32>
    %178 = arith.addf %152, %177 : vector<2x256xf32>
    %c0_50 = arith.constant 0 : index
    %c0_51 = arith.constant 0 : index
    %c158 = arith.constant 158 : index
    %179 = vector.load %arg5[%c0_50, %c0_51, %c158] : memref<2x2x512xf32, #tpu.memory_space<vmem>>, vector<2x2x256xf32>
    %c36 = arith.constant 36 : index
    %180 = memref.load %arg3[%c36] : memref<98xf32, #tpu.memory_space<smem>>
    %c85 = arith.constant 85 : index
    %181 = memref.load %arg3[%c85] : memref<98xf32, #tpu.memory_space<smem>>
    %182 = vector.extract_strided_slice %179 {offsets = [0, 0, 0], sizes = [1, 2, 256], strides = [1, 1, 1]} : vector<2x2x256xf32> to vector<1x2x256xf32>
    %183 = vector.shape_cast %182 : vector<1x2x256xf32> to vector<2x256xf32>
    %184 = vector.broadcast %180 : f32 to vector<2x256xf32>
    %185 = arith.mulf %184, %183 : vector<2x256xf32>
    %186 = vector.extract_strided_slice %179 {offsets = [1, 0, 0], sizes = [1, 2, 256], strides = [1, 1, 1]} : vector<2x2x256xf32> to vector<1x2x256xf32>
    %187 = vector.shape_cast %186 : vector<1x2x256xf32> to vector<2x256xf32>
    %188 = vector.broadcast %181 : f32 to vector<2x256xf32>
    %189 = arith.mulf %188, %187 : vector<2x256xf32>
    %190 = arith.addf %185, %189 : vector<2x256xf32>
    %191 = arith.addf %165, %190 : vector<2x256xf32>
    %c0_52 = arith.constant 0 : index
    %c0_53 = arith.constant 0 : index
    %c174 = arith.constant 174 : index
    %192 = vector.load %arg5[%c0_52, %c0_53, %c174] : memref<2x2x512xf32, #tpu.memory_space<vmem>>, vector<2x2x256xf32>
    %c43 = arith.constant 43 : index
    %193 = memref.load %arg3[%c43] : memref<98xf32, #tpu.memory_space<smem>>
    %c92 = arith.constant 92 : index
    %194 = memref.load %arg3[%c92] : memref<98xf32, #tpu.memory_space<smem>>
    %195 = vector.extract_strided_slice %192 {offsets = [0, 0, 0], sizes = [1, 2, 256], strides = [1, 1, 1]} : vector<2x2x256xf32> to vector<1x2x256xf32>
    %196 = vector.shape_cast %195 : vector<1x2x256xf32> to vector<2x256xf32>
    %197 = vector.broadcast %193 : f32 to vector<2x256xf32>
    %198 = arith.mulf %197, %196 : vector<2x256xf32>
    %199 = vector.extract_strided_slice %192 {offsets = [1, 0, 0], sizes = [1, 2, 256], strides = [1, 1, 1]} : vector<2x2x256xf32> to vector<1x2x256xf32>
    %200 = vector.shape_cast %199 : vector<1x2x256xf32> to vector<2x256xf32>
    %201 = vector.broadcast %194 : f32 to vector<2x256xf32>
    %202 = arith.mulf %201, %200 : vector<2x256xf32>
    %203 = arith.addf %198, %202 : vector<2x256xf32>
    %204 = arith.addf %178, %203 : vector<2x256xf32>
    %c1_54 = arith.constant 1 : index
    %c0_55 = arith.constant 0 : index
    %205 = vector.load %arg2[%c1_54, %c0_55] : memref<7x256xf32, #tpu.memory_space<vmem>>, vector<1x256xf32>
    %206 = arith.addf %204, %191 : vector<2x256xf32>
    %207 = vector.broadcast %205 : vector<1x256xf32> to vector<2x256xf32>
    %208 = arith.mulf %207, %206 : vector<2x256xf32>
    %209 = arith.addf %111, %208 : vector<2x256xf32>
    %cst_56 = arith.constant 0.000000e+00 : f32
    %210 = vector.broadcast %cst_56 : f32 to vector<2x256xf32>
    %cst_57 = arith.constant 0.000000e+00 : f32
    %211 = vector.broadcast %cst_57 : f32 to vector<2x256xf32>
    %c0_58 = arith.constant 0 : index
    %c0_59 = arith.constant 0 : index
    %c79 = arith.constant 79 : index
    %212 = vector.load %arg5[%c0_58, %c0_59, %c79] : memref<2x2x512xf32, #tpu.memory_space<vmem>>, vector<2x2x256xf32>
    %c2 = arith.constant 2 : index
    %213 = memref.load %arg3[%c2] : memref<98xf32, #tpu.memory_space<smem>>
    %c51 = arith.constant 51 : index
    %214 = memref.load %arg3[%c51] : memref<98xf32, #tpu.memory_space<smem>>
    %215 = vector.extract_strided_slice %212 {offsets = [0, 0, 0], sizes = [1, 2, 256], strides = [1, 1, 1]} : vector<2x2x256xf32> to vector<1x2x256xf32>
    %216 = vector.shape_cast %215 : vector<1x2x256xf32> to vector<2x256xf32>
    %217 = vector.broadcast %213 : f32 to vector<2x256xf32>
    %218 = arith.mulf %217, %216 : vector<2x256xf32>
    %219 = vector.extract_strided_slice %212 {offsets = [1, 0, 0], sizes = [1, 2, 256], strides = [1, 1, 1]} : vector<2x2x256xf32> to vector<1x2x256xf32>
    %220 = vector.shape_cast %219 : vector<1x2x256xf32> to vector<2x256xf32>
    %221 = vector.broadcast %214 : f32 to vector<2x256xf32>
    %222 = arith.mulf %221, %220 : vector<2x256xf32>
    %223 = arith.addf %218, %222 : vector<2x256xf32>
    %224 = arith.addf %210, %223 : vector<2x256xf32>
    %c0_60 = arith.constant 0 : index
    %c0_61 = arith.constant 0 : index
    %c95 = arith.constant 95 : index
    %225 = vector.load %arg5[%c0_60, %c0_61, %c95] : memref<2x2x512xf32, #tpu.memory_space<vmem>>, vector<2x2x256xf32>
    %c9 = arith.constant 9 : index
    %226 = memref.load %arg3[%c9] : memref<98xf32, #tpu.memory_space<smem>>
    %c58 = arith.constant 58 : index
    %227 = memref.load %arg3[%c58] : memref<98xf32, #tpu.memory_space<smem>>
    %228 = vector.extract_strided_slice %225 {offsets = [0, 0, 0], sizes = [1, 2, 256], strides = [1, 1, 1]} : vector<2x2x256xf32> to vector<1x2x256xf32>
    %229 = vector.shape_cast %228 : vector<1x2x256xf32> to vector<2x256xf32>
    %230 = vector.broadcast %226 : f32 to vector<2x256xf32>
    %231 = arith.mulf %230, %229 : vector<2x256xf32>
    %232 = vector.extract_strided_slice %225 {offsets = [1, 0, 0], sizes = [1, 2, 256], strides = [1, 1, 1]} : vector<2x2x256xf32> to vector<1x2x256xf32>
    %233 = vector.shape_cast %232 : vector<1x2x256xf32> to vector<2x256xf32>
    %234 = vector.broadcast %227 : f32 to vector<2x256xf32>
    %235 = arith.mulf %234, %233 : vector<2x256xf32>
    %236 = arith.addf %231, %235 : vector<2x256xf32>
    %237 = arith.addf %211, %236 : vector<2x256xf32>
    %c0_62 = arith.constant 0 : index
    %c0_63 = arith.constant 0 : index
    %c111 = arith.constant 111 : index
    %238 = vector.load %arg5[%c0_62, %c0_63, %c111] : memref<2x2x512xf32, #tpu.memory_space<vmem>>, vector<2x2x256xf32>
    %c16 = arith.constant 16 : index
    %239 = memref.load %arg3[%c16] : memref<98xf32, #tpu.memory_space<smem>>
    %c65 = arith.constant 65 : index
    %240 = memref.load %arg3[%c65] : memref<98xf32, #tpu.memory_space<smem>>
    %241 = vector.extract_strided_slice %238 {offsets = [0, 0, 0], sizes = [1, 2, 256], strides = [1, 1, 1]} : vector<2x2x256xf32> to vector<1x2x256xf32>
    %242 = vector.shape_cast %241 : vector<1x2x256xf32> to vector<2x256xf32>
    %243 = vector.broadcast %239 : f32 to vector<2x256xf32>
    %244 = arith.mulf %243, %242 : vector<2x256xf32>
    %245 = vector.extract_strided_slice %238 {offsets = [1, 0, 0], sizes = [1, 2, 256], strides = [1, 1, 1]} : vector<2x2x256xf32> to vector<1x2x256xf32>
    %246 = vector.shape_cast %245 : vector<1x2x256xf32> to vector<2x256xf32>
    %247 = vector.broadcast %240 : f32 to vector<2x256xf32>
    %248 = arith.mulf %247, %246 : vector<2x256xf32>
    %249 = arith.addf %244, %248 : vector<2x256xf32>
    %250 = arith.addf %224, %249 : vector<2x256xf32>
    %c0_64 = arith.constant 0 : index
    %c0_65 = arith.constant 0 : index
    %c127 = arith.constant 127 : index
    %251 = vector.load %arg5[%c0_64, %c0_65, %c127] : memref<2x2x512xf32, #tpu.memory_space<vmem>>, vector<2x2x256xf32>
    %c23 = arith.constant 23 : index
    %252 = memref.load %arg3[%c23] : memref<98xf32, #tpu.memory_space<smem>>
    %c72 = arith.constant 72 : index
    %253 = memref.load %arg3[%c72] : memref<98xf32, #tpu.memory_space<smem>>
    %254 = vector.extract_strided_slice %251 {offsets = [0, 0, 0], sizes = [1, 2, 256], strides = [1, 1, 1]} : vector<2x2x256xf32> to vector<1x2x256xf32>
    %255 = vector.shape_cast %254 : vector<1x2x256xf32> to vector<2x256xf32>
    %256 = vector.broadcast %252 : f32 to vector<2x256xf32>
    %257 = arith.mulf %256, %255 : vector<2x256xf32>
    %258 = vector.extract_strided_slice %251 {offsets = [1, 0, 0], sizes = [1, 2, 256], strides = [1, 1, 1]} : vector<2x2x256xf32> to vector<1x2x256xf32>
    %259 = vector.shape_cast %258 : vector<1x2x256xf32> to vector<2x256xf32>
    %260 = vector.broadcast %253 : f32 to vector<2x256xf32>
    %261 = arith.mulf %260, %259 : vector<2x256xf32>
    %262 = arith.addf %257, %261 : vector<2x256xf32>
    %263 = arith.addf %237, %262 : vector<2x256xf32>
    %c0_66 = arith.constant 0 : index
    %c0_67 = arith.constant 0 : index
    %c143 = arith.constant 143 : index
    %264 = vector.load %arg5[%c0_66, %c0_67, %c143] : memref<2x2x512xf32, #tpu.memory_space<vmem>>, vector<2x2x256xf32>
    %c30 = arith.constant 30 : index
    %265 = memref.load %arg3[%c30] : memref<98xf32, #tpu.memory_space<smem>>
    %c79_68 = arith.constant 79 : index
    %266 = memref.load %arg3[%c79_68] : memref<98xf32, #tpu.memory_space<smem>>
    %267 = vector.extract_strided_slice %264 {offsets = [0, 0, 0], sizes = [1, 2, 256], strides = [1, 1, 1]} : vector<2x2x256xf32> to vector<1x2x256xf32>
    %268 = vector.shape_cast %267 : vector<1x2x256xf32> to vector<2x256xf32>
    %269 = vector.broadcast %265 : f32 to vector<2x256xf32>
    %270 = arith.mulf %269, %268 : vector<2x256xf32>
    %271 = vector.extract_strided_slice %264 {offsets = [1, 0, 0], sizes = [1, 2, 256], strides = [1, 1, 1]} : vector<2x2x256xf32> to vector<1x2x256xf32>
    %272 = vector.shape_cast %271 : vector<1x2x256xf32> to vector<2x256xf32>
    %273 = vector.broadcast %266 : f32 to vector<2x256xf32>
    %274 = arith.mulf %273, %272 : vector<2x256xf32>
    %275 = arith.addf %270, %274 : vector<2x256xf32>
    %276 = arith.addf %250, %275 : vector<2x256xf32>
    %c0_69 = arith.constant 0 : index
    %c0_70 = arith.constant 0 : index
    %c159 = arith.constant 159 : index
    %277 = vector.load %arg5[%c0_69, %c0_70, %c159] : memref<2x2x512xf32, #tpu.memory_space<vmem>>, vector<2x2x256xf32>
    %c37 = arith.constant 37 : index
    %278 = memref.load %arg3[%c37] : memref<98xf32, #tpu.memory_space<smem>>
    %c86 = arith.constant 86 : index
    %279 = memref.load %arg3[%c86] : memref<98xf32, #tpu.memory_space<smem>>
    %280 = vector.extract_strided_slice %277 {offsets = [0, 0, 0], sizes = [1, 2, 256], strides = [1, 1, 1]} : vector<2x2x256xf32> to vector<1x2x256xf32>
    %281 = vector.shape_cast %280 : vector<1x2x256xf32> to vector<2x256xf32>
    %282 = vector.broadcast %278 : f32 to vector<2x256xf32>
    %283 = arith.mulf %282, %281 : vector<2x256xf32>
    %284 = vector.extract_strided_slice %277 {offsets = [1, 0, 0], sizes = [1, 2, 256], strides = [1, 1, 1]} : vector<2x2x256xf32> to vector<1x2x256xf32>
    %285 = vector.shape_cast %284 : vector<1x2x256xf32> to vector<2x256xf32>
    %286 = vector.broadcast %279 : f32 to vector<2x256xf32>
    %287 = arith.mulf %286, %285 : vector<2x256xf32>
    %288 = arith.addf %283, %287 : vector<2x256xf32>
    %289 = arith.addf %263, %288 : vector<2x256xf32>
    %c0_71 = arith.constant 0 : index
    %c0_72 = arith.constant 0 : index
    %c175 = arith.constant 175 : index
    %290 = vector.load %arg5[%c0_71, %c0_72, %c175] : memref<2x2x512xf32, #tpu.memory_space<vmem>>, vector<2x2x256xf32>
    %c44 = arith.constant 44 : index
    %291 = memref.load %arg3[%c44] : memref<98xf32, #tpu.memory_space<smem>>
    %c93_73 = arith.constant 93 : index
    %292 = memref.load %arg3[%c93_73] : memref<98xf32, #tpu.memory_space<smem>>
    %293 = vector.extract_strided_slice %290 {offsets = [0, 0, 0], sizes = [1, 2, 256], strides = [1, 1, 1]} : vector<2x2x256xf32> to vector<1x2x256xf32>
    %294 = vector.shape_cast %293 : vector<1x2x256xf32> to vector<2x256xf32>
    %295 = vector.broadcast %291 : f32 to vector<2x256xf32>
    %296 = arith.mulf %295, %294 : vector<2x256xf32>
    %297 = vector.extract_strided_slice %290 {offsets = [1, 0, 0], sizes = [1, 2, 256], strides = [1, 1, 1]} : vector<2x2x256xf32> to vector<1x2x256xf32>
    %298 = vector.shape_cast %297 : vector<1x2x256xf32> to vector<2x256xf32>
    %299 = vector.broadcast %292 : f32 to vector<2x256xf32>
    %300 = arith.mulf %299, %298 : vector<2x256xf32>
    %301 = arith.addf %296, %300 : vector<2x256xf32>
    %302 = arith.addf %276, %301 : vector<2x256xf32>
    %c2_74 = arith.constant 2 : index
    %c0_75 = arith.constant 0 : index
    %303 = vector.load %arg2[%c2_74, %c0_75] : memref<7x256xf32, #tpu.memory_space<vmem>>, vector<1x256xf32>
    %304 = arith.addf %302, %289 : vector<2x256xf32>
    %305 = vector.broadcast %303 : vector<1x256xf32> to vector<2x256xf32>
    %306 = arith.mulf %305, %304 : vector<2x256xf32>
    %307 = arith.addf %209, %306 : vector<2x256xf32>
    %cst_76 = arith.constant 0.000000e+00 : f32
    %308 = vector.broadcast %cst_76 : f32 to vector<2x256xf32>
    %cst_77 = arith.constant 0.000000e+00 : f32
    %309 = vector.broadcast %cst_77 : f32 to vector<2x256xf32>
    %c0_78 = arith.constant 0 : index
    %c0_79 = arith.constant 0 : index
    %c80 = arith.constant 80 : index
    %310 = vector.load %arg5[%c0_78, %c0_79, %c80] : memref<2x2x512xf32, #tpu.memory_space<vmem>>, vector<2x2x256xf32>
    %c3 = arith.constant 3 : index
    %311 = memref.load %arg3[%c3] : memref<98xf32, #tpu.memory_space<smem>>
    %c52 = arith.constant 52 : index
    %312 = memref.load %arg3[%c52] : memref<98xf32, #tpu.memory_space<smem>>
    %313 = vector.extract_strided_slice %310 {offsets = [0, 0, 0], sizes = [1, 2, 256], strides = [1, 1, 1]} : vector<2x2x256xf32> to vector<1x2x256xf32>
    %314 = vector.shape_cast %313 : vector<1x2x256xf32> to vector<2x256xf32>
    %315 = vector.broadcast %311 : f32 to vector<2x256xf32>
    %316 = arith.mulf %315, %314 : vector<2x256xf32>
    %317 = vector.extract_strided_slice %310 {offsets = [1, 0, 0], sizes = [1, 2, 256], strides = [1, 1, 1]} : vector<2x2x256xf32> to vector<1x2x256xf32>
    %318 = vector.shape_cast %317 : vector<1x2x256xf32> to vector<2x256xf32>
    %319 = vector.broadcast %312 : f32 to vector<2x256xf32>
    %320 = arith.mulf %319, %318 : vector<2x256xf32>
    %321 = arith.addf %316, %320 : vector<2x256xf32>
    %322 = arith.addf %308, %321 : vector<2x256xf32>
    %c0_80 = arith.constant 0 : index
    %c0_81 = arith.constant 0 : index
    %c96 = arith.constant 96 : index
    %323 = vector.load %arg5[%c0_80, %c0_81, %c96] : memref<2x2x512xf32, #tpu.memory_space<vmem>>, vector<2x2x256xf32>
    %c10 = arith.constant 10 : index
    %324 = memref.load %arg3[%c10] : memref<98xf32, #tpu.memory_space<smem>>
    %c59 = arith.constant 59 : index
    %325 = memref.load %arg3[%c59] : memref<98xf32, #tpu.memory_space<smem>>
    %326 = vector.extract_strided_slice %323 {offsets = [0, 0, 0], sizes = [1, 2, 256], strides = [1, 1, 1]} : vector<2x2x256xf32> to vector<1x2x256xf32>
    %327 = vector.shape_cast %326 : vector<1x2x256xf32> to vector<2x256xf32>
    %328 = vector.broadcast %324 : f32 to vector<2x256xf32>
    %329 = arith.mulf %328, %327 : vector<2x256xf32>
    %330 = vector.extract_strided_slice %323 {offsets = [1, 0, 0], sizes = [1, 2, 256], strides = [1, 1, 1]} : vector<2x2x256xf32> to vector<1x2x256xf32>
    %331 = vector.shape_cast %330 : vector<1x2x256xf32> to vector<2x256xf32>
    %332 = vector.broadcast %325 : f32 to vector<2x256xf32>
    %333 = arith.mulf %332, %331 : vector<2x256xf32>
    %334 = arith.addf %329, %333 : vector<2x256xf32>
    %335 = arith.addf %309, %334 : vector<2x256xf32>
    %c0_82 = arith.constant 0 : index
    %c0_83 = arith.constant 0 : index
    %c112 = arith.constant 112 : index
    %336 = vector.load %arg5[%c0_82, %c0_83, %c112] : memref<2x2x512xf32, #tpu.memory_space<vmem>>, vector<2x2x256xf32>
    %c17 = arith.constant 17 : index
    %337 = memref.load %arg3[%c17] : memref<98xf32, #tpu.memory_space<smem>>
    %c66 = arith.constant 66 : index
    %338 = memref.load %arg3[%c66] : memref<98xf32, #tpu.memory_space<smem>>
    %339 = vector.extract_strided_slice %336 {offsets = [0, 0, 0], sizes = [1, 2, 256], strides = [1, 1, 1]} : vector<2x2x256xf32> to vector<1x2x256xf32>
    %340 = vector.shape_cast %339 : vector<1x2x256xf32> to vector<2x256xf32>
    %341 = vector.broadcast %337 : f32 to vector<2x256xf32>
    %342 = arith.mulf %341, %340 : vector<2x256xf32>
    %343 = vector.extract_strided_slice %336 {offsets = [1, 0, 0], sizes = [1, 2, 256], strides = [1, 1, 1]} : vector<2x2x256xf32> to vector<1x2x256xf32>
    %344 = vector.shape_cast %343 : vector<1x2x256xf32> to vector<2x256xf32>
    %345 = vector.broadcast %338 : f32 to vector<2x256xf32>
    %346 = arith.mulf %345, %344 : vector<2x256xf32>
    %347 = arith.addf %342, %346 : vector<2x256xf32>
    %348 = arith.addf %322, %347 : vector<2x256xf32>
    %c0_84 = arith.constant 0 : index
    %c0_85 = arith.constant 0 : index
    %c128_86 = arith.constant 128 : index
    %349 = vector.load %arg5[%c0_84, %c0_85, %c128_86] : memref<2x2x512xf32, #tpu.memory_space<vmem>>, vector<2x2x256xf32>
    %c24 = arith.constant 24 : index
    %350 = memref.load %arg3[%c24] : memref<98xf32, #tpu.memory_space<smem>>
    %c73 = arith.constant 73 : index
    %351 = memref.load %arg3[%c73] : memref<98xf32, #tpu.memory_space<smem>>
    %352 = vector.extract_strided_slice %349 {offsets = [0, 0, 0], sizes = [1, 2, 256], strides = [1, 1, 1]} : vector<2x2x256xf32> to vector<1x2x256xf32>
    %353 = vector.shape_cast %352 : vector<1x2x256xf32> to vector<2x256xf32>
    %354 = vector.broadcast %350 : f32 to vector<2x256xf32>
    %355 = arith.mulf %354, %353 : vector<2x256xf32>
    %356 = vector.extract_strided_slice %349 {offsets = [1, 0, 0], sizes = [1, 2, 256], strides = [1, 1, 1]} : vector<2x2x256xf32> to vector<1x2x256xf32>
    %357 = vector.shape_cast %356 : vector<1x2x256xf32> to vector<2x256xf32>
    %358 = vector.broadcast %351 : f32 to vector<2x256xf32>
    %359 = arith.mulf %358, %357 : vector<2x256xf32>
    %360 = arith.addf %355, %359 : vector<2x256xf32>
    %361 = arith.addf %335, %360 : vector<2x256xf32>
    %c0_87 = arith.constant 0 : index
    %c0_88 = arith.constant 0 : index
    %c144 = arith.constant 144 : index
    %362 = vector.load %arg5[%c0_87, %c0_88, %c144] : memref<2x2x512xf32, #tpu.memory_space<vmem>>, vector<2x2x256xf32>
    %c31 = arith.constant 31 : index
    %363 = memref.load %arg3[%c31] : memref<98xf32, #tpu.memory_space<smem>>
    %c80_89 = arith.constant 80 : index
    %364 = memref.load %arg3[%c80_89] : memref<98xf32, #tpu.memory_space<smem>>
    %365 = vector.extract_strided_slice %362 {offsets = [0, 0, 0], sizes = [1, 2, 256], strides = [1, 1, 1]} : vector<2x2x256xf32> to vector<1x2x256xf32>
    %366 = vector.shape_cast %365 : vector<1x2x256xf32> to vector<2x256xf32>
    %367 = vector.broadcast %363 : f32 to vector<2x256xf32>
    %368 = arith.mulf %367, %366 : vector<2x256xf32>
    %369 = vector.extract_strided_slice %362 {offsets = [1, 0, 0], sizes = [1, 2, 256], strides = [1, 1, 1]} : vector<2x2x256xf32> to vector<1x2x256xf32>
    %370 = vector.shape_cast %369 : vector<1x2x256xf32> to vector<2x256xf32>
    %371 = vector.broadcast %364 : f32 to vector<2x256xf32>
    %372 = arith.mulf %371, %370 : vector<2x256xf32>
    %373 = arith.addf %368, %372 : vector<2x256xf32>
    %374 = arith.addf %348, %373 : vector<2x256xf32>
    %c0_90 = arith.constant 0 : index
    %c0_91 = arith.constant 0 : index
    %c160 = arith.constant 160 : index
    %375 = vector.load %arg5[%c0_90, %c0_91, %c160] : memref<2x2x512xf32, #tpu.memory_space<vmem>>, vector<2x2x256xf32>
    %c38 = arith.constant 38 : index
    %376 = memref.load %arg3[%c38] : memref<98xf32, #tpu.memory_space<smem>>
    %c87 = arith.constant 87 : index
    %377 = memref.load %arg3[%c87] : memref<98xf32, #tpu.memory_space<smem>>
    %378 = vector.extract_strided_slice %375 {offsets = [0, 0, 0], sizes = [1, 2, 256], strides = [1, 1, 1]} : vector<2x2x256xf32> to vector<1x2x256xf32>
    %379 = vector.shape_cast %378 : vector<1x2x256xf32> to vector<2x256xf32>
    %380 = vector.broadcast %376 : f32 to vector<2x256xf32>
    %381 = arith.mulf %380, %379 : vector<2x256xf32>
    %382 = vector.extract_strided_slice %375 {offsets = [1, 0, 0], sizes = [1, 2, 256], strides = [1, 1, 1]} : vector<2x2x256xf32> to vector<1x2x256xf32>
    %383 = vector.shape_cast %382 : vector<1x2x256xf32> to vector<2x256xf32>
    %384 = vector.broadcast %377 : f32 to vector<2x256xf32>
    %385 = arith.mulf %384, %383 : vector<2x256xf32>
    %386 = arith.addf %381, %385 : vector<2x256xf32>
    %387 = arith.addf %361, %386 : vector<2x256xf32>
    %c0_92 = arith.constant 0 : index
    %c0_93 = arith.constant 0 : index
    %c176 = arith.constant 176 : index
    %388 = vector.load %arg5[%c0_92, %c0_93, %c176] : memref<2x2x512xf32, #tpu.memory_space<vmem>>, vector<2x2x256xf32>
    %c45 = arith.constant 45 : index
    %389 = memref.load %arg3[%c45] : memref<98xf32, #tpu.memory_space<smem>>
    %c94_94 = arith.constant 94 : index
    %390 = memref.load %arg3[%c94_94] : memref<98xf32, #tpu.memory_space<smem>>
    %391 = vector.extract_strided_slice %388 {offsets = [0, 0, 0], sizes = [1, 2, 256], strides = [1, 1, 1]} : vector<2x2x256xf32> to vector<1x2x256xf32>
    %392 = vector.shape_cast %391 : vector<1x2x256xf32> to vector<2x256xf32>
    %393 = vector.broadcast %389 : f32 to vector<2x256xf32>
    %394 = arith.mulf %393, %392 : vector<2x256xf32>
    %395 = vector.extract_strided_slice %388 {offsets = [1, 0, 0], sizes = [1, 2, 256], strides = [1, 1, 1]} : vector<2x2x256xf32> to vector<1x2x256xf32>
    %396 = vector.shape_cast %395 : vector<1x2x256xf32> to vector<2x256xf32>
    %397 = vector.broadcast %390 : f32 to vector<2x256xf32>
    %398 = arith.mulf %397, %396 : vector<2x256xf32>
    %399 = arith.addf %394, %398 : vector<2x256xf32>
    %400 = arith.addf %374, %399 : vector<2x256xf32>
    %c3_95 = arith.constant 3 : index
    %c0_96 = arith.constant 0 : index
    %401 = vector.load %arg2[%c3_95, %c0_96] : memref<7x256xf32, #tpu.memory_space<vmem>>, vector<1x256xf32>
    %402 = arith.addf %400, %387 : vector<2x256xf32>
    %403 = vector.broadcast %401 : vector<1x256xf32> to vector<2x256xf32>
    %404 = arith.mulf %403, %402 : vector<2x256xf32>
    %405 = arith.addf %307, %404 : vector<2x256xf32>
    %cst_97 = arith.constant 0.000000e+00 : f32
    %406 = vector.broadcast %cst_97 : f32 to vector<2x256xf32>
    %cst_98 = arith.constant 0.000000e+00 : f32
    %407 = vector.broadcast %cst_98 : f32 to vector<2x256xf32>
    %c0_99 = arith.constant 0 : index
    %c0_100 = arith.constant 0 : index
    %c81 = arith.constant 81 : index
    %408 = vector.load %arg5[%c0_99, %c0_100, %c81] : memref<2x2x512xf32, #tpu.memory_space<vmem>>, vector<2x2x256xf32>
    %c4 = arith.constant 4 : index
    %409 = memref.load %arg3[%c4] : memref<98xf32, #tpu.memory_space<smem>>
    %c53 = arith.constant 53 : index
    %410 = memref.load %arg3[%c53] : memref<98xf32, #tpu.memory_space<smem>>
    %411 = vector.extract_strided_slice %408 {offsets = [0, 0, 0], sizes = [1, 2, 256], strides = [1, 1, 1]} : vector<2x2x256xf32> to vector<1x2x256xf32>
    %412 = vector.shape_cast %411 : vector<1x2x256xf32> to vector<2x256xf32>
    %413 = vector.broadcast %409 : f32 to vector<2x256xf32>
    %414 = arith.mulf %413, %412 : vector<2x256xf32>
    %415 = vector.extract_strided_slice %408 {offsets = [1, 0, 0], sizes = [1, 2, 256], strides = [1, 1, 1]} : vector<2x2x256xf32> to vector<1x2x256xf32>
    %416 = vector.shape_cast %415 : vector<1x2x256xf32> to vector<2x256xf32>
    %417 = vector.broadcast %410 : f32 to vector<2x256xf32>
    %418 = arith.mulf %417, %416 : vector<2x256xf32>
    %419 = arith.addf %414, %418 : vector<2x256xf32>
    %420 = arith.addf %406, %419 : vector<2x256xf32>
    %c0_101 = arith.constant 0 : index
    %c0_102 = arith.constant 0 : index
    %c97 = arith.constant 97 : index
    %421 = vector.load %arg5[%c0_101, %c0_102, %c97] : memref<2x2x512xf32, #tpu.memory_space<vmem>>, vector<2x2x256xf32>
    %c11 = arith.constant 11 : index
    %422 = memref.load %arg3[%c11] : memref<98xf32, #tpu.memory_space<smem>>
    %c60 = arith.constant 60 : index
    %423 = memref.load %arg3[%c60] : memref<98xf32, #tpu.memory_space<smem>>
    %424 = vector.extract_strided_slice %421 {offsets = [0, 0, 0], sizes = [1, 2, 256], strides = [1, 1, 1]} : vector<2x2x256xf32> to vector<1x2x256xf32>
    %425 = vector.shape_cast %424 : vector<1x2x256xf32> to vector<2x256xf32>
    %426 = vector.broadcast %422 : f32 to vector<2x256xf32>
    %427 = arith.mulf %426, %425 : vector<2x256xf32>
    %428 = vector.extract_strided_slice %421 {offsets = [1, 0, 0], sizes = [1, 2, 256], strides = [1, 1, 1]} : vector<2x2x256xf32> to vector<1x2x256xf32>
    %429 = vector.shape_cast %428 : vector<1x2x256xf32> to vector<2x256xf32>
    %430 = vector.broadcast %423 : f32 to vector<2x256xf32>
    %431 = arith.mulf %430, %429 : vector<2x256xf32>
    %432 = arith.addf %427, %431 : vector<2x256xf32>
    %433 = arith.addf %407, %432 : vector<2x256xf32>
    %c0_103 = arith.constant 0 : index
    %c0_104 = arith.constant 0 : index
    %c113 = arith.constant 113 : index
    %434 = vector.load %arg5[%c0_103, %c0_104, %c113] : memref<2x2x512xf32, #tpu.memory_space<vmem>>, vector<2x2x256xf32>
    %c18 = arith.constant 18 : index
    %435 = memref.load %arg3[%c18] : memref<98xf32, #tpu.memory_space<smem>>
    %c67 = arith.constant 67 : index
    %436 = memref.load %arg3[%c67] : memref<98xf32, #tpu.memory_space<smem>>
    %437 = vector.extract_strided_slice %434 {offsets = [0, 0, 0], sizes = [1, 2, 256], strides = [1, 1, 1]} : vector<2x2x256xf32> to vector<1x2x256xf32>
    %438 = vector.shape_cast %437 : vector<1x2x256xf32> to vector<2x256xf32>
    %439 = vector.broadcast %435 : f32 to vector<2x256xf32>
    %440 = arith.mulf %439, %438 : vector<2x256xf32>
    %441 = vector.extract_strided_slice %434 {offsets = [1, 0, 0], sizes = [1, 2, 256], strides = [1, 1, 1]} : vector<2x2x256xf32> to vector<1x2x256xf32>
    %442 = vector.shape_cast %441 : vector<1x2x256xf32> to vector<2x256xf32>
    %443 = vector.broadcast %436 : f32 to vector<2x256xf32>
    %444 = arith.mulf %443, %442 : vector<2x256xf32>
    %445 = arith.addf %440, %444 : vector<2x256xf32>
    %446 = arith.addf %420, %445 : vector<2x256xf32>
    %c0_105 = arith.constant 0 : index
    %c0_106 = arith.constant 0 : index
    %c129 = arith.constant 129 : index
    %447 = vector.load %arg5[%c0_105, %c0_106, %c129] : memref<2x2x512xf32, #tpu.memory_space<vmem>>, vector<2x2x256xf32>
    %c25 = arith.constant 25 : index
    %448 = memref.load %arg3[%c25] : memref<98xf32, #tpu.memory_space<smem>>
    %c74 = arith.constant 74 : index
    %449 = memref.load %arg3[%c74] : memref<98xf32, #tpu.memory_space<smem>>
    %450 = vector.extract_strided_slice %447 {offsets = [0, 0, 0], sizes = [1, 2, 256], strides = [1, 1, 1]} : vector<2x2x256xf32> to vector<1x2x256xf32>
    %451 = vector.shape_cast %450 : vector<1x2x256xf32> to vector<2x256xf32>
    %452 = vector.broadcast %448 : f32 to vector<2x256xf32>
    %453 = arith.mulf %452, %451 : vector<2x256xf32>
    %454 = vector.extract_strided_slice %447 {offsets = [1, 0, 0], sizes = [1, 2, 256], strides = [1, 1, 1]} : vector<2x2x256xf32> to vector<1x2x256xf32>
    %455 = vector.shape_cast %454 : vector<1x2x256xf32> to vector<2x256xf32>
    %456 = vector.broadcast %449 : f32 to vector<2x256xf32>
    %457 = arith.mulf %456, %455 : vector<2x256xf32>
    %458 = arith.addf %453, %457 : vector<2x256xf32>
    %459 = arith.addf %433, %458 : vector<2x256xf32>
    %c0_107 = arith.constant 0 : index
    %c0_108 = arith.constant 0 : index
    %c145 = arith.constant 145 : index
    %460 = vector.load %arg5[%c0_107, %c0_108, %c145] : memref<2x2x512xf32, #tpu.memory_space<vmem>>, vector<2x2x256xf32>
    %c32 = arith.constant 32 : index
    %461 = memref.load %arg3[%c32] : memref<98xf32, #tpu.memory_space<smem>>
    %c81_109 = arith.constant 81 : index
    %462 = memref.load %arg3[%c81_109] : memref<98xf32, #tpu.memory_space<smem>>
    %463 = vector.extract_strided_slice %460 {offsets = [0, 0, 0], sizes = [1, 2, 256], strides = [1, 1, 1]} : vector<2x2x256xf32> to vector<1x2x256xf32>
    %464 = vector.shape_cast %463 : vector<1x2x256xf32> to vector<2x256xf32>
    %465 = vector.broadcast %461 : f32 to vector<2x256xf32>
    %466 = arith.mulf %465, %464 : vector<2x256xf32>
    %467 = vector.extract_strided_slice %460 {offsets = [1, 0, 0], sizes = [1, 2, 256], strides = [1, 1, 1]} : vector<2x2x256xf32> to vector<1x2x256xf32>
    %468 = vector.shape_cast %467 : vector<1x2x256xf32> to vector<2x256xf32>
    %469 = vector.broadcast %462 : f32 to vector<2x256xf32>
    %470 = arith.mulf %469, %468 : vector<2x256xf32>
    %471 = arith.addf %466, %470 : vector<2x256xf32>
    %472 = arith.addf %446, %471 : vector<2x256xf32>
    %c0_110 = arith.constant 0 : index
    %c0_111 = arith.constant 0 : index
    %c161 = arith.constant 161 : index
    %473 = vector.load %arg5[%c0_110, %c0_111, %c161] : memref<2x2x512xf32, #tpu.memory_space<vmem>>, vector<2x2x256xf32>
    %c39 = arith.constant 39 : index
    %474 = memref.load %arg3[%c39] : memref<98xf32, #tpu.memory_space<smem>>
    %c88 = arith.constant 88 : index
    %475 = memref.load %arg3[%c88] : memref<98xf32, #tpu.memory_space<smem>>
    %476 = vector.extract_strided_slice %473 {offsets = [0, 0, 0], sizes = [1, 2, 256], strides = [1, 1, 1]} : vector<2x2x256xf32> to vector<1x2x256xf32>
    %477 = vector.shape_cast %476 : vector<1x2x256xf32> to vector<2x256xf32>
    %478 = vector.broadcast %474 : f32 to vector<2x256xf32>
    %479 = arith.mulf %478, %477 : vector<2x256xf32>
    %480 = vector.extract_strided_slice %473 {offsets = [1, 0, 0], sizes = [1, 2, 256], strides = [1, 1, 1]} : vector<2x2x256xf32> to vector<1x2x256xf32>
    %481 = vector.shape_cast %480 : vector<1x2x256xf32> to vector<2x256xf32>
    %482 = vector.broadcast %475 : f32 to vector<2x256xf32>
    %483 = arith.mulf %482, %481 : vector<2x256xf32>
    %484 = arith.addf %479, %483 : vector<2x256xf32>
    %485 = arith.addf %459, %484 : vector<2x256xf32>
    %c0_112 = arith.constant 0 : index
    %c0_113 = arith.constant 0 : index
    %c177 = arith.constant 177 : index
    %486 = vector.load %arg5[%c0_112, %c0_113, %c177] : memref<2x2x512xf32, #tpu.memory_space<vmem>>, vector<2x2x256xf32>
    %c46 = arith.constant 46 : index
    %487 = memref.load %arg3[%c46] : memref<98xf32, #tpu.memory_space<smem>>
    %c95_114 = arith.constant 95 : index
    %488 = memref.load %arg3[%c95_114] : memref<98xf32, #tpu.memory_space<smem>>
    %489 = vector.extract_strided_slice %486 {offsets = [0, 0, 0], sizes = [1, 2, 256], strides = [1, 1, 1]} : vector<2x2x256xf32> to vector<1x2x256xf32>
    %490 = vector.shape_cast %489 : vector<1x2x256xf32> to vector<2x256xf32>
    %491 = vector.broadcast %487 : f32 to vector<2x256xf32>
    %492 = arith.mulf %491, %490 : vector<2x256xf32>
    %493 = vector.extract_strided_slice %486 {offsets = [1, 0, 0], sizes = [1, 2, 256], strides = [1, 1, 1]} : vector<2x2x256xf32> to vector<1x2x256xf32>
    %494 = vector.shape_cast %493 : vector<1x2x256xf32> to vector<2x256xf32>
    %495 = vector.broadcast %488 : f32 to vector<2x256xf32>
    %496 = arith.mulf %495, %494 : vector<2x256xf32>
    %497 = arith.addf %492, %496 : vector<2x256xf32>
    %498 = arith.addf %472, %497 : vector<2x256xf32>
    %c4_115 = arith.constant 4 : index
    %c0_116 = arith.constant 0 : index
    %499 = vector.load %arg2[%c4_115, %c0_116] : memref<7x256xf32, #tpu.memory_space<vmem>>, vector<1x256xf32>
    %500 = arith.addf %498, %485 : vector<2x256xf32>
    %501 = vector.broadcast %499 : vector<1x256xf32> to vector<2x256xf32>
    %502 = arith.mulf %501, %500 : vector<2x256xf32>
    %503 = arith.addf %405, %502 : vector<2x256xf32>
    %cst_117 = arith.constant 0.000000e+00 : f32
    %504 = vector.broadcast %cst_117 : f32 to vector<2x256xf32>
    %cst_118 = arith.constant 0.000000e+00 : f32
    %505 = vector.broadcast %cst_118 : f32 to vector<2x256xf32>
    %c0_119 = arith.constant 0 : index
    %c0_120 = arith.constant 0 : index
    %c82 = arith.constant 82 : index
    %506 = vector.load %arg5[%c0_119, %c0_120, %c82] : memref<2x2x512xf32, #tpu.memory_space<vmem>>, vector<2x2x256xf32>
    %c5 = arith.constant 5 : index
    %507 = memref.load %arg3[%c5] : memref<98xf32, #tpu.memory_space<smem>>
    %c54 = arith.constant 54 : index
    %508 = memref.load %arg3[%c54] : memref<98xf32, #tpu.memory_space<smem>>
    %509 = vector.extract_strided_slice %506 {offsets = [0, 0, 0], sizes = [1, 2, 256], strides = [1, 1, 1]} : vector<2x2x256xf32> to vector<1x2x256xf32>
    %510 = vector.shape_cast %509 : vector<1x2x256xf32> to vector<2x256xf32>
    %511 = vector.broadcast %507 : f32 to vector<2x256xf32>
    %512 = arith.mulf %511, %510 : vector<2x256xf32>
    %513 = vector.extract_strided_slice %506 {offsets = [1, 0, 0], sizes = [1, 2, 256], strides = [1, 1, 1]} : vector<2x2x256xf32> to vector<1x2x256xf32>
    %514 = vector.shape_cast %513 : vector<1x2x256xf32> to vector<2x256xf32>
    %515 = vector.broadcast %508 : f32 to vector<2x256xf32>
    %516 = arith.mulf %515, %514 : vector<2x256xf32>
    %517 = arith.addf %512, %516 : vector<2x256xf32>
    %518 = arith.addf %504, %517 : vector<2x256xf32>
    %c0_121 = arith.constant 0 : index
    %c0_122 = arith.constant 0 : index
    %c98 = arith.constant 98 : index
    %519 = vector.load %arg5[%c0_121, %c0_122, %c98] : memref<2x2x512xf32, #tpu.memory_space<vmem>>, vector<2x2x256xf32>
    %c12 = arith.constant 12 : index
    %520 = memref.load %arg3[%c12] : memref<98xf32, #tpu.memory_space<smem>>
    %c61 = arith.constant 61 : index
    %521 = memref.load %arg3[%c61] : memref<98xf32, #tpu.memory_space<smem>>
    %522 = vector.extract_strided_slice %519 {offsets = [0, 0, 0], sizes = [1, 2, 256], strides = [1, 1, 1]} : vector<2x2x256xf32> to vector<1x2x256xf32>
    %523 = vector.shape_cast %522 : vector<1x2x256xf32> to vector<2x256xf32>
    %524 = vector.broadcast %520 : f32 to vector<2x256xf32>
    %525 = arith.mulf %524, %523 : vector<2x256xf32>
    %526 = vector.extract_strided_slice %519 {offsets = [1, 0, 0], sizes = [1, 2, 256], strides = [1, 1, 1]} : vector<2x2x256xf32> to vector<1x2x256xf32>
    %527 = vector.shape_cast %526 : vector<1x2x256xf32> to vector<2x256xf32>
    %528 = vector.broadcast %521 : f32 to vector<2x256xf32>
    %529 = arith.mulf %528, %527 : vector<2x256xf32>
    %530 = arith.addf %525, %529 : vector<2x256xf32>
    %531 = arith.addf %505, %530 : vector<2x256xf32>
    %c0_123 = arith.constant 0 : index
    %c0_124 = arith.constant 0 : index
    %c114 = arith.constant 114 : index
    %532 = vector.load %arg5[%c0_123, %c0_124, %c114] : memref<2x2x512xf32, #tpu.memory_space<vmem>>, vector<2x2x256xf32>
    %c19 = arith.constant 19 : index
    %533 = memref.load %arg3[%c19] : memref<98xf32, #tpu.memory_space<smem>>
    %c68 = arith.constant 68 : index
    %534 = memref.load %arg3[%c68] : memref<98xf32, #tpu.memory_space<smem>>
    %535 = vector.extract_strided_slice %532 {offsets = [0, 0, 0], sizes = [1, 2, 256], strides = [1, 1, 1]} : vector<2x2x256xf32> to vector<1x2x256xf32>
    %536 = vector.shape_cast %535 : vector<1x2x256xf32> to vector<2x256xf32>
    %537 = vector.broadcast %533 : f32 to vector<2x256xf32>
    %538 = arith.mulf %537, %536 : vector<2x256xf32>
    %539 = vector.extract_strided_slice %532 {offsets = [1, 0, 0], sizes = [1, 2, 256], strides = [1, 1, 1]} : vector<2x2x256xf32> to vector<1x2x256xf32>
    %540 = vector.shape_cast %539 : vector<1x2x256xf32> to vector<2x256xf32>
    %541 = vector.broadcast %534 : f32 to vector<2x256xf32>
    %542 = arith.mulf %541, %540 : vector<2x256xf32>
    %543 = arith.addf %538, %542 : vector<2x256xf32>
    %544 = arith.addf %518, %543 : vector<2x256xf32>
    %c0_125 = arith.constant 0 : index
    %c0_126 = arith.constant 0 : index
    %c130 = arith.constant 130 : index
    %545 = vector.load %arg5[%c0_125, %c0_126, %c130] : memref<2x2x512xf32, #tpu.memory_space<vmem>>, vector<2x2x256xf32>
    %c26 = arith.constant 26 : index
    %546 = memref.load %arg3[%c26] : memref<98xf32, #tpu.memory_space<smem>>
    %c75 = arith.constant 75 : index
    %547 = memref.load %arg3[%c75] : memref<98xf32, #tpu.memory_space<smem>>
    %548 = vector.extract_strided_slice %545 {offsets = [0, 0, 0], sizes = [1, 2, 256], strides = [1, 1, 1]} : vector<2x2x256xf32> to vector<1x2x256xf32>
    %549 = vector.shape_cast %548 : vector<1x2x256xf32> to vector<2x256xf32>
    %550 = vector.broadcast %546 : f32 to vector<2x256xf32>
    %551 = arith.mulf %550, %549 : vector<2x256xf32>
    %552 = vector.extract_strided_slice %545 {offsets = [1, 0, 0], sizes = [1, 2, 256], strides = [1, 1, 1]} : vector<2x2x256xf32> to vector<1x2x256xf32>
    %553 = vector.shape_cast %552 : vector<1x2x256xf32> to vector<2x256xf32>
    %554 = vector.broadcast %547 : f32 to vector<2x256xf32>
    %555 = arith.mulf %554, %553 : vector<2x256xf32>
    %556 = arith.addf %551, %555 : vector<2x256xf32>
    %557 = arith.addf %531, %556 : vector<2x256xf32>
    %c0_127 = arith.constant 0 : index
    %c0_128 = arith.constant 0 : index
    %c146 = arith.constant 146 : index
    %558 = vector.load %arg5[%c0_127, %c0_128, %c146] : memref<2x2x512xf32, #tpu.memory_space<vmem>>, vector<2x2x256xf32>
    %c33 = arith.constant 33 : index
    %559 = memref.load %arg3[%c33] : memref<98xf32, #tpu.memory_space<smem>>
    %c82_129 = arith.constant 82 : index
    %560 = memref.load %arg3[%c82_129] : memref<98xf32, #tpu.memory_space<smem>>
    %561 = vector.extract_strided_slice %558 {offsets = [0, 0, 0], sizes = [1, 2, 256], strides = [1, 1, 1]} : vector<2x2x256xf32> to vector<1x2x256xf32>
    %562 = vector.shape_cast %561 : vector<1x2x256xf32> to vector<2x256xf32>
    %563 = vector.broadcast %559 : f32 to vector<2x256xf32>
    %564 = arith.mulf %563, %562 : vector<2x256xf32>
    %565 = vector.extract_strided_slice %558 {offsets = [1, 0, 0], sizes = [1, 2, 256], strides = [1, 1, 1]} : vector<2x2x256xf32> to vector<1x2x256xf32>
    %566 = vector.shape_cast %565 : vector<1x2x256xf32> to vector<2x256xf32>
    %567 = vector.broadcast %560 : f32 to vector<2x256xf32>
    %568 = arith.mulf %567, %566 : vector<2x256xf32>
    %569 = arith.addf %564, %568 : vector<2x256xf32>
    %570 = arith.addf %544, %569 : vector<2x256xf32>
    %c0_130 = arith.constant 0 : index
    %c0_131 = arith.constant 0 : index
    %c162 = arith.constant 162 : index
    %571 = vector.load %arg5[%c0_130, %c0_131, %c162] : memref<2x2x512xf32, #tpu.memory_space<vmem>>, vector<2x2x256xf32>
    %c40 = arith.constant 40 : index
    %572 = memref.load %arg3[%c40] : memref<98xf32, #tpu.memory_space<smem>>
    %c89 = arith.constant 89 : index
    %573 = memref.load %arg3[%c89] : memref<98xf32, #tpu.memory_space<smem>>
    %574 = vector.extract_strided_slice %571 {offsets = [0, 0, 0], sizes = [1, 2, 256], strides = [1, 1, 1]} : vector<2x2x256xf32> to vector<1x2x256xf32>
    %575 = vector.shape_cast %574 : vector<1x2x256xf32> to vector<2x256xf32>
    %576 = vector.broadcast %572 : f32 to vector<2x256xf32>
    %577 = arith.mulf %576, %575 : vector<2x256xf32>
    %578 = vector.extract_strided_slice %571 {offsets = [1, 0, 0], sizes = [1, 2, 256], strides = [1, 1, 1]} : vector<2x2x256xf32> to vector<1x2x256xf32>
    %579 = vector.shape_cast %578 : vector<1x2x256xf32> to vector<2x256xf32>
    %580 = vector.broadcast %573 : f32 to vector<2x256xf32>
    %581 = arith.mulf %580, %579 : vector<2x256xf32>
    %582 = arith.addf %577, %581 : vector<2x256xf32>
    %583 = arith.addf %557, %582 : vector<2x256xf32>
    %c0_132 = arith.constant 0 : index
    %c0_133 = arith.constant 0 : index
    %c178 = arith.constant 178 : index
    %584 = vector.load %arg5[%c0_132, %c0_133, %c178] : memref<2x2x512xf32, #tpu.memory_space<vmem>>, vector<2x2x256xf32>
    %c47 = arith.constant 47 : index
    %585 = memref.load %arg3[%c47] : memref<98xf32, #tpu.memory_space<smem>>
    %c96_134 = arith.constant 96 : index
    %586 = memref.load %arg3[%c96_134] : memref<98xf32, #tpu.memory_space<smem>>
    %587 = vector.extract_strided_slice %584 {offsets = [0, 0, 0], sizes = [1, 2, 256], strides = [1, 1, 1]} : vector<2x2x256xf32> to vector<1x2x256xf32>
    %588 = vector.shape_cast %587 : vector<1x2x256xf32> to vector<2x256xf32>
    %589 = vector.broadcast %585 : f32 to vector<2x256xf32>
    %590 = arith.mulf %589, %588 : vector<2x256xf32>
    %591 = vector.extract_strided_slice %584 {offsets = [1, 0, 0], sizes = [1, 2, 256], strides = [1, 1, 1]} : vector<2x2x256xf32> to vector<1x2x256xf32>
    %592 = vector.shape_cast %591 : vector<1x2x256xf32> to vector<2x256xf32>
    %593 = vector.broadcast %586 : f32 to vector<2x256xf32>
    %594 = arith.mulf %593, %592 : vector<2x256xf32>
    %595 = arith.addf %590, %594 : vector<2x256xf32>
    %596 = arith.addf %570, %595 : vector<2x256xf32>
    %c5_135 = arith.constant 5 : index
    %c0_136 = arith.constant 0 : index
    %597 = vector.load %arg2[%c5_135, %c0_136] : memref<7x256xf32, #tpu.memory_space<vmem>>, vector<1x256xf32>
    %598 = arith.addf %596, %583 : vector<2x256xf32>
    %599 = vector.broadcast %597 : vector<1x256xf32> to vector<2x256xf32>
    %600 = arith.mulf %599, %598 : vector<2x256xf32>
    %601 = arith.addf %503, %600 : vector<2x256xf32>
    %cst_137 = arith.constant 0.000000e+00 : f32
    %602 = vector.broadcast %cst_137 : f32 to vector<2x256xf32>
    %cst_138 = arith.constant 0.000000e+00 : f32
    %603 = vector.broadcast %cst_138 : f32 to vector<2x256xf32>
    %c0_139 = arith.constant 0 : index
    %c0_140 = arith.constant 0 : index
    %c83 = arith.constant 83 : index
    %604 = vector.load %arg5[%c0_139, %c0_140, %c83] : memref<2x2x512xf32, #tpu.memory_space<vmem>>, vector<2x2x256xf32>
    %c6 = arith.constant 6 : index
    %605 = memref.load %arg3[%c6] : memref<98xf32, #tpu.memory_space<smem>>
    %c55 = arith.constant 55 : index
    %606 = memref.load %arg3[%c55] : memref<98xf32, #tpu.memory_space<smem>>
    %607 = vector.extract_strided_slice %604 {offsets = [0, 0, 0], sizes = [1, 2, 256], strides = [1, 1, 1]} : vector<2x2x256xf32> to vector<1x2x256xf32>
    %608 = vector.shape_cast %607 : vector<1x2x256xf32> to vector<2x256xf32>
    %609 = vector.broadcast %605 : f32 to vector<2x256xf32>
    %610 = arith.mulf %609, %608 : vector<2x256xf32>
    %611 = vector.extract_strided_slice %604 {offsets = [1, 0, 0], sizes = [1, 2, 256], strides = [1, 1, 1]} : vector<2x2x256xf32> to vector<1x2x256xf32>
    %612 = vector.shape_cast %611 : vector<1x2x256xf32> to vector<2x256xf32>
    %613 = vector.broadcast %606 : f32 to vector<2x256xf32>
    %614 = arith.mulf %613, %612 : vector<2x256xf32>
    %615 = arith.addf %610, %614 : vector<2x256xf32>
    %616 = arith.addf %602, %615 : vector<2x256xf32>
    %c0_141 = arith.constant 0 : index
    %c0_142 = arith.constant 0 : index
    %c99 = arith.constant 99 : index
    %617 = vector.load %arg5[%c0_141, %c0_142, %c99] : memref<2x2x512xf32, #tpu.memory_space<vmem>>, vector<2x2x256xf32>
    %c13 = arith.constant 13 : index
    %618 = memref.load %arg3[%c13] : memref<98xf32, #tpu.memory_space<smem>>
    %c62 = arith.constant 62 : index
    %619 = memref.load %arg3[%c62] : memref<98xf32, #tpu.memory_space<smem>>
    %620 = vector.extract_strided_slice %617 {offsets = [0, 0, 0], sizes = [1, 2, 256], strides = [1, 1, 1]} : vector<2x2x256xf32> to vector<1x2x256xf32>
    %621 = vector.shape_cast %620 : vector<1x2x256xf32> to vector<2x256xf32>
    %622 = vector.broadcast %618 : f32 to vector<2x256xf32>
    %623 = arith.mulf %622, %621 : vector<2x256xf32>
    %624 = vector.extract_strided_slice %617 {offsets = [1, 0, 0], sizes = [1, 2, 256], strides = [1, 1, 1]} : vector<2x2x256xf32> to vector<1x2x256xf32>
    %625 = vector.shape_cast %624 : vector<1x2x256xf32> to vector<2x256xf32>
    %626 = vector.broadcast %619 : f32 to vector<2x256xf32>
    %627 = arith.mulf %626, %625 : vector<2x256xf32>
    %628 = arith.addf %623, %627 : vector<2x256xf32>
    %629 = arith.addf %603, %628 : vector<2x256xf32>
    %c0_143 = arith.constant 0 : index
    %c0_144 = arith.constant 0 : index
    %c115 = arith.constant 115 : index
    %630 = vector.load %arg5[%c0_143, %c0_144, %c115] : memref<2x2x512xf32, #tpu.memory_space<vmem>>, vector<2x2x256xf32>
    %c20 = arith.constant 20 : index
    %631 = memref.load %arg3[%c20] : memref<98xf32, #tpu.memory_space<smem>>
    %c69 = arith.constant 69 : index
    %632 = memref.load %arg3[%c69] : memref<98xf32, #tpu.memory_space<smem>>
    %633 = vector.extract_strided_slice %630 {offsets = [0, 0, 0], sizes = [1, 2, 256], strides = [1, 1, 1]} : vector<2x2x256xf32> to vector<1x2x256xf32>
    %634 = vector.shape_cast %633 : vector<1x2x256xf32> to vector<2x256xf32>
    %635 = vector.broadcast %631 : f32 to vector<2x256xf32>
    %636 = arith.mulf %635, %634 : vector<2x256xf32>
    %637 = vector.extract_strided_slice %630 {offsets = [1, 0, 0], sizes = [1, 2, 256], strides = [1, 1, 1]} : vector<2x2x256xf32> to vector<1x2x256xf32>
    %638 = vector.shape_cast %637 : vector<1x2x256xf32> to vector<2x256xf32>
    %639 = vector.broadcast %632 : f32 to vector<2x256xf32>
    %640 = arith.mulf %639, %638 : vector<2x256xf32>
    %641 = arith.addf %636, %640 : vector<2x256xf32>
    %642 = arith.addf %616, %641 : vector<2x256xf32>
    %c0_145 = arith.constant 0 : index
    %c0_146 = arith.constant 0 : index
    %c131 = arith.constant 131 : index
    %643 = vector.load %arg5[%c0_145, %c0_146, %c131] : memref<2x2x512xf32, #tpu.memory_space<vmem>>, vector<2x2x256xf32>
    %c27 = arith.constant 27 : index
    %644 = memref.load %arg3[%c27] : memref<98xf32, #tpu.memory_space<smem>>
    %c76 = arith.constant 76 : index
    %645 = memref.load %arg3[%c76] : memref<98xf32, #tpu.memory_space<smem>>
    %646 = vector.extract_strided_slice %643 {offsets = [0, 0, 0], sizes = [1, 2, 256], strides = [1, 1, 1]} : vector<2x2x256xf32> to vector<1x2x256xf32>
    %647 = vector.shape_cast %646 : vector<1x2x256xf32> to vector<2x256xf32>
    %648 = vector.broadcast %644 : f32 to vector<2x256xf32>
    %649 = arith.mulf %648, %647 : vector<2x256xf32>
    %650 = vector.extract_strided_slice %643 {offsets = [1, 0, 0], sizes = [1, 2, 256], strides = [1, 1, 1]} : vector<2x2x256xf32> to vector<1x2x256xf32>
    %651 = vector.shape_cast %650 : vector<1x2x256xf32> to vector<2x256xf32>
    %652 = vector.broadcast %645 : f32 to vector<2x256xf32>
    %653 = arith.mulf %652, %651 : vector<2x256xf32>
    %654 = arith.addf %649, %653 : vector<2x256xf32>
    %655 = arith.addf %629, %654 : vector<2x256xf32>
    %c0_147 = arith.constant 0 : index
    %c0_148 = arith.constant 0 : index
    %c147 = arith.constant 147 : index
    %656 = vector.load %arg5[%c0_147, %c0_148, %c147] : memref<2x2x512xf32, #tpu.memory_space<vmem>>, vector<2x2x256xf32>
    %c34 = arith.constant 34 : index
    %657 = memref.load %arg3[%c34] : memref<98xf32, #tpu.memory_space<smem>>
    %c83_149 = arith.constant 83 : index
    %658 = memref.load %arg3[%c83_149] : memref<98xf32, #tpu.memory_space<smem>>
    %659 = vector.extract_strided_slice %656 {offsets = [0, 0, 0], sizes = [1, 2, 256], strides = [1, 1, 1]} : vector<2x2x256xf32> to vector<1x2x256xf32>
    %660 = vector.shape_cast %659 : vector<1x2x256xf32> to vector<2x256xf32>
    %661 = vector.broadcast %657 : f32 to vector<2x256xf32>
    %662 = arith.mulf %661, %660 : vector<2x256xf32>
    %663 = vector.extract_strided_slice %656 {offsets = [1, 0, 0], sizes = [1, 2, 256], strides = [1, 1, 1]} : vector<2x2x256xf32> to vector<1x2x256xf32>
    %664 = vector.shape_cast %663 : vector<1x2x256xf32> to vector<2x256xf32>
    %665 = vector.broadcast %658 : f32 to vector<2x256xf32>
    %666 = arith.mulf %665, %664 : vector<2x256xf32>
    %667 = arith.addf %662, %666 : vector<2x256xf32>
    %668 = arith.addf %642, %667 : vector<2x256xf32>
    %c0_150 = arith.constant 0 : index
    %c0_151 = arith.constant 0 : index
    %c163 = arith.constant 163 : index
    %669 = vector.load %arg5[%c0_150, %c0_151, %c163] : memref<2x2x512xf32, #tpu.memory_space<vmem>>, vector<2x2x256xf32>
    %c41 = arith.constant 41 : index
    %670 = memref.load %arg3[%c41] : memref<98xf32, #tpu.memory_space<smem>>
    %c90 = arith.constant 90 : index
    %671 = memref.load %arg3[%c90] : memref<98xf32, #tpu.memory_space<smem>>
    %672 = vector.extract_strided_slice %669 {offsets = [0, 0, 0], sizes = [1, 2, 256], strides = [1, 1, 1]} : vector<2x2x256xf32> to vector<1x2x256xf32>
    %673 = vector.shape_cast %672 : vector<1x2x256xf32> to vector<2x256xf32>
    %674 = vector.broadcast %670 : f32 to vector<2x256xf32>
    %675 = arith.mulf %674, %673 : vector<2x256xf32>
    %676 = vector.extract_strided_slice %669 {offsets = [1, 0, 0], sizes = [1, 2, 256], strides = [1, 1, 1]} : vector<2x2x256xf32> to vector<1x2x256xf32>
    %677 = vector.shape_cast %676 : vector<1x2x256xf32> to vector<2x256xf32>
    %678 = vector.broadcast %671 : f32 to vector<2x256xf32>
    %679 = arith.mulf %678, %677 : vector<2x256xf32>
    %680 = arith.addf %675, %679 : vector<2x256xf32>
    %681 = arith.addf %655, %680 : vector<2x256xf32>
    %c0_152 = arith.constant 0 : index
    %c0_153 = arith.constant 0 : index
    %c179 = arith.constant 179 : index
    %682 = vector.load %arg5[%c0_152, %c0_153, %c179] : memref<2x2x512xf32, #tpu.memory_space<vmem>>, vector<2x2x256xf32>
    %c48 = arith.constant 48 : index
    %683 = memref.load %arg3[%c48] : memref<98xf32, #tpu.memory_space<smem>>
    %c97_154 = arith.constant 97 : index
    %684 = memref.load %arg3[%c97_154] : memref<98xf32, #tpu.memory_space<smem>>
    %685 = vector.extract_strided_slice %682 {offsets = [0, 0, 0], sizes = [1, 2, 256], strides = [1, 1, 1]} : vector<2x2x256xf32> to vector<1x2x256xf32>
    %686 = vector.shape_cast %685 : vector<1x2x256xf32> to vector<2x256xf32>
    %687 = vector.broadcast %683 : f32 to vector<2x256xf32>
    %688 = arith.mulf %687, %686 : vector<2x256xf32>
    %689 = vector.extract_strided_slice %682 {offsets = [1, 0, 0], sizes = [1, 2, 256], strides = [1, 1, 1]} : vector<2x2x256xf32> to vector<1x2x256xf32>
    %690 = vector.shape_cast %689 : vector<1x2x256xf32> to vector<2x256xf32>
    %691 = vector.broadcast %684 : f32 to vector<2x256xf32>
    %692 = arith.mulf %691, %690 : vector<2x256xf32>
    %693 = arith.addf %688, %692 : vector<2x256xf32>
    %694 = arith.addf %668, %693 : vector<2x256xf32>
    %c6_155 = arith.constant 6 : index
    %c0_156 = arith.constant 0 : index
    %695 = vector.load %arg2[%c6_155, %c0_156] : memref<7x256xf32, #tpu.memory_space<vmem>>, vector<1x256xf32>
    %696 = arith.addf %694, %681 : vector<2x256xf32>
    %697 = vector.broadcast %695 : vector<1x256xf32> to vector<2x256xf32>
    %698 = arith.mulf %697, %696 : vector<2x256xf32>
    %699 = arith.addf %601, %698 : vector<2x256xf32>
    %700 = arith.negf %699 : vector<2x256xf32>
    %701 = math.exp %700 : vector<2x256xf32>
    %cst_157 = arith.constant 1.000000e+00 : f32
    %702 = vector.broadcast %cst_157 : f32 to vector<2x256xf32>
    %703 = arith.addf %702, %701 : vector<2x256xf32>
    %704 = arith.divf %702, %703 : vector<2x256xf32>
    %cst_158 = arith.constant 1.000000e+00 : f32
    %705 = vector.broadcast %cst_158 : f32 to vector<2x256xf32>
    %706 = arith.addf %705, %704 : vector<2x256xf32>
    %c0_159 = arith.constant 0 : index
    %c0_160 = arith.constant 0 : index
    %c0_161 = arith.constant 0 : index
    %707 = vector.load %arg1[%c0_159, %c0_160, %c0_161] : memref<2x4x256xf32, #tpu.memory_space<vmem>>, vector<2x4x256xf32>
    %708 = vector.shape_cast %706 : vector<2x256xf32> to vector<2x1x256xf32>
    %709 = vector.broadcast %708 : vector<2x1x256xf32> to vector<2x4x256xf32>
    %710 = arith.mulf %707, %709 : vector<2x4x256xf32>
    %c0_162 = arith.constant 0 : index
    %c0_163 = arith.constant 0 : index
    %c0_164 = arith.constant 0 : index
    %711 = vector.load %arg4[%c0_162, %c0_163, %c0_164] : memref<2x4x256xf32, #tpu.memory_space<vmem>>, vector<2x4x256xf32>
    tpu.vector_store %arg4[%c0_162, %c0_163, %c0_164], %710 {strides = array<i32>} : memref<2x4x256xf32, #tpu.memory_space<vmem>>, vector<2x4x256xf32>,
    return
  }
  func.func @transform_0(%arg0: i32) -> (i32, i32, i32) {
    %c0_i32 = arith.constant 0 : i32
    %c0_i32_0 = arith.constant 0 : i32
    %c0_i32_1 = arith.constant 0 : i32
    return %arg0, %c0_i32, %c0_i32_0 : i32, i32, i32
  }
  func.func @transform_1(%arg0: i32) -> (i32, i32) {
    %c0_i32 = arith.constant 0 : i32
    %c0_i32_0 = arith.constant 0 : i32
    %c0_i32_1 = arith.constant 0 : i32
    return %c0_i32, %c0_i32_0 : i32, i32
  }
  func.func @transform_2(%arg0: i32) -> i32 {
    %c0_i32 = arith.constant 0 : i32
    %c0_i32_0 = arith.constant 0 : i32
    return %c0_i32 : i32
  }
  func.func @transform_3(%arg0: i32) -> (i32, i32, i32) {
    %c0_i32 = arith.constant 0 : i32
    %c0_i32_0 = arith.constant 0 : i32
    %c0_i32_1 = arith.constant 0 : i32
    return %arg0, %c0_i32, %c0_i32_0 : i32, i32, i32
  }
}

</mosaic_0001>

<bundles_post_ra>
// kernel: tpu_custom_call.1
= control target key start
LH: loop header
LB: loop body
LE: loop exit
PB: predicated region body
PF: predicated region fallthrough
CT: control target
= control target key end

     0   :  { %8 = vsyncpa [#allocation4], 0  ;;  %s2169_s0 = inlined_call_operand.hbm [shape: f32[2,4,256], index: 0, kind: input, shape index: {}]   ;;  %s2170_s1 = inlined_call_operand.hbm [shape: f32[7,256], index: 1, kind: input, shape index: {}]   ;;  %s2171_s2 = inlined_call_operand.vmem [shape: f32[98], index: 2, kind: input, shape index: {}]   ;;  %s2172_s3 = inlined_call_operand.hbm [shape: f32[2,4,256], index: 3, kind: output, shape index: {}]  }
   0x1   :  { %9 = vsyncpa [#allocation8], 0 }
   0x2   :  { %10 = vsyncpa [#allocation6], 0 }
   0x3   :  { %11 = vsyncpa [#allocation5], 0  ;;  %s1484_s12 = smov [#allocation3]  }
   0x4   :  { %s17_s13 = sshll.u32 %s1484_s12, 4  ;;  %s18_s13 = int_to_ptr.vmem [resolvable:$true] %s17_s13 }
   0x5   :  { %s1412_s14 = scalar_lea.vmem %s18_s13, 256  ;;  %p1417_p1 = scmp.lt.s32.totalorder %s18_s13, %s18_s13 }
   0x6   :  { %p1413_p0 = scmp.ne.s32.totalorder %s18_s13, %s1412_s14  ;;  %p1418_p2 = scmp.lt.s32.totalorder %s1412_s14, %s1412_s14 }
   0x8   :  { %p1419_p3 = por %p1418_p2, %p1417_p1 }
   0xa   :  { %p1420_p4 = pnand %p1419_p3, %p1413_p0 }
   0xc   :  { %1423 = shalt.err (!%p1420_p4)
}
   0xd   :  { %s1485_s15 = smov 128   ;;  %s1486_s16 = smov 8  }
   0xe   :  { %23 = dma.hbm_to_vmem [thread:$0]  %s2169_s0, 256, %s18_s13, [#allocation4], %s1485_s15, %s1485_s15, %s1486_s16  }
   0xf   :  { %s1487_s19 = smov [#allocation7]   ;;  %s40_s23 = sshll.u32 %s2171_s2, 4  ;;  %s41_s23 = int_to_ptr.vmem [resolvable:$true] %s40_s23 }
  0x10   :  { %s30_s20 = sshll.u32 %s1487_s19, 4  ;;  %s31_s20 = int_to_ptr.vmem [resolvable:$true] %s30_s20 }
  0x11   :  { %s1432_s24 = scalar_lea.vmem %s31_s20, 256  ;;  %p1437_p6 = scmp.lt.s32.totalorder %s31_s20, %s31_s20 }
  0x12   :  { %p1433_p5 = scmp.ne.s32.totalorder %s31_s20, %s1432_s24  ;;  %p1438_p7 = scmp.lt.s32.totalorder %s1432_s24, %s1432_s24 }
  0x14   :  { %p1439_p8 = por %p1438_p7, %p1437_p6 }
  0x16   :  { %p1440_p9 = pnand %p1439_p8, %p1433_p5 }
  0x18   :  { %1443 = shalt.err (!%p1440_p9)
}
  0x19   :  { %33 = dma.hbm_to_vmem [thread:$0]  %s2170_s1, 256, %s31_s20, [#allocation8]  }
  0x1a   :  { %s1444_s0 = scalar_lea.vmem %s41_s23, 16  ;;  %p1449_p11 = scmp.lt.s32.totalorder %s41_s23, %s41_s23 }
  0x1b   :  { %p1445_p10 = scmp.ne.s32.totalorder %s41_s23, %s1444_s0  ;;  %p1450_p12 = scmp.lt.s32.totalorder %s1444_s0, %s1444_s0 }
  0x1d   :  { %p1451_p13 = por %p1450_p12, %p1449_p11 }
  0x1f   :  { %p1452_p0 = pnand %p1451_p13, %p1445_p10 }
  0x21   :  { %1455 = shalt.err (!%p1452_p0)
}
  0x22   :  { %s1488_s2 = smov [#allocation9]  }
  0x23   :  { %43 = dma.vmem_to_smem %s41_s23, 16, %s1488_s2, [#allocation6]  }
  0x24   :  { %1476 = dma.done.wait [#allocation4], 256  }
  0x25   :  { %1477 = vsyncadd [#allocation4], 4294967040 }
  0x26   :  { %1478 = dma.done.wait [#allocation8], 256  }
  0x27   :  { %1479 = vsyncadd [#allocation8], 4294967040 }
  0x28   :  { %1480 = dma.done.wait [#allocation6], 16  }
  0x29   :  { %1481 = vsyncadd [#allocation6], 4294967280 }
  0x2a   :  { %53 = sfence }
  0x2b   :  { %v58_v0 = vld [vmem:[#allocation3] sm:$0xff]  ;;  %v59_v1 = vld [vmem:[#allocation3 + $0x8] sm:$0xff]  ;;  %vm66_vm0 = vcmask 1043456   ;;  %v135_v2 = vlaneseq  ;;  %v1489_v3 = vmov 0.0   ;;  %s1544_s1 = sld [smem:[#allocation9 + $0x23]]  ;;  %vm152_vm1 = vcmask 1041409  }
  0x2c   :  { %56 = vst [vmem:[#allocation2 + $0x6] sm:$0x3] %v1489_v3  ;;  %57 = vst [vmem:[#allocation2 + $0xe] sm:$0x3] %v1489_v3  ;;  %v62_v4 = vcombine.high %v58_v0, %v58_v0  ;;  %v63_v5 = vcombine.high %v59_v1, %v59_v1  ;;  %v67_v6 = vsel %vm66_vm0, %v58_v0, -inf  ;;  %v81_v7 = vsel %vm66_vm0, %v59_v1, -inf }
  0x2d   :  { %54 = vst [vmem:[#allocation2] sm:$0x3] %v1489_v3  ;;  %55 = vst [vmem:[#allocation2 + $0x8] sm:$0x3] %v1489_v3  ;;  %v68_v8 = vrot.slane %v67_v6, 4  ;;  %v82_v9 = vrot.slane %v81_v7, 4 }
  0x2e   :  { %v95_v10 = vsel %vm66_vm0, %v58_v0, 0.0  ;;  %v109_v11 = vsel %vm66_vm0, %v59_v1, 0.0  ;;  %v74_v12 = vsel %vm66_vm0, %v62_v4, -inf  ;;  %v88_v13 = vsel %vm66_vm0, %v63_v5, -inf  ;;  %s1546_s27 = sld [smem:[#allocation9 + $0x54]] }
  0x2f   :  { %v96_v14 = vrot.slane %v95_v10, 4  ;;  %v102_v15 = vsel %vm66_vm0, %v62_v4, 0.0  ;;  %v69_v16 = vmax.f32 %v67_v6, %v68_v8  ;;  %v75_v17 = vrot.slane %v74_v12, 4  ;;  %s1548_s28 = sld [smem:[#allocation9 + $0x15]] }
  0x30   :  { %v83_v18 = vmax.f32 %v81_v7, %v82_v9  ;;  %v89_v19 = vrot.slane %v88_v13, 4  ;;  %v103_v21 = vrot.slane %v102_v15, 4  ;;  %v110_v22 = vrot.slane %v109_v11, 4  ;;  %s1550_s29 = sld [smem:[#allocation9 + $0x46]] }
  0x31   :  { %v97_v20 = vadd.f32 %v96_v14, %v95_v10  ;;  %v116_v23 = vsel %vm66_vm0, %v63_v5, 0.0  ;;  %v70_v24 = vrot.slane %v69_v16, 2  ;;  %v76_v25 = vmax.f32 %v74_v12, %v75_v17  ;;  %s1552_s30 = sld [smem:[#allocation9 + $0x24]] }
  0x32   :  { %v84_v26 = vrot.slane %v83_v18, 2  ;;  %v90_v27 = vmax.f32 %v88_v13, %v89_v19  ;;  %v104_v29 = vadd.f32 %v103_v21, %v102_v15  ;;  %v111_v30 = vadd.f32 %v110_v22, %v109_v11  ;;  %s1557_s4 = sld [smem:[#allocation9 + $0x55]] }
  0x33   :  { %v98_v28 = vrot.slane %v97_v20, 2  ;;  %v117_v31 = vrot.slane %v116_v23, 4  ;;  %v71_v32 = vmax.f32 %v69_v16, %v70_v24  ;;  %v77_v33 = vrot.slane %v76_v25, 2  ;;  %s1559_s5 = sld [smem:[#allocation9 + $0x16]] }
  0x34   :  { %v85_v34 = vmax.f32 %v83_v18, %v84_v26  ;;  %v91_v35 = vrot.slane %v90_v27, 2  ;;  %v105_v37 = vrot.slane %v104_v29, 2  ;;  %v112_v38 = vrot.slane %v111_v30, 2  ;;  %s1561_s6 = sld [smem:[#allocation9 + $0x47]] }
  0x35   :  { %v99_v36 = vadd.f32 %v98_v28, %v97_v20  ;;  %v118_v39 = vadd.f32 %v117_v31, %v116_v23  ;;  %v72_v40 = vrot.slane %v71_v32, 1  ;;  %v78_v41 = vmax.f32 %v76_v25, %v77_v33  ;;  %s1563_s7 = sld [smem:[#allocation9 + $0x25]] }
  0x36   :  { %v86_v42 = vrot.slane %v85_v34, 1  ;;  %v92_v43 = vmax.f32 %v90_v27, %v91_v35  ;;  %v106_v45 = vadd.f32 %v105_v37, %v104_v29  ;;  %v113_v46 = vadd.f32 %v112_v38, %v111_v30  ;;  %s1568_s8 = sld [smem:[#allocation9 + $0x56]] }
  0x37   :  { %v100_v44 = vrot.slane %v99_v36, 1  ;;  %v119_v47 = vrot.slane %v118_v39, 2  ;;  %v73_v48 = vmax.f32 %v71_v32, %v72_v40  ;;  %v79_v49 = vrot.slane %v78_v41, 1  ;;  %s1570_s9 = sld [smem:[#allocation9 + $0x17]] }
  0x38   :  { %v87_v50 = vmax.f32 %v85_v34, %v86_v42  ;;  %v93_v51 = vrot.slane %v92_v43, 1  ;;  %v107_v53 = vrot.slane %v106_v45, 1  ;;  %v114_v54 = vrot.slane %v113_v46, 1  ;;  %s1574_s10 = sld [smem:[#allocation9 + $0x48]] }
  0x39   :  { %v101_v52 = vadd.f32 %v100_v44, %v99_v36  ;;  %v120_v55 = vadd.f32 %v119_v47, %v118_v39  ;;  %v80_v56 = vmax.f32 %v78_v41, %v79_v49  ;;  %v1490_v58 = vmov 1983009808   ;;  %s1576_s11 = sld [smem:[#allocation9 + $0x26]] }
  0x3a   :  { %v94_v57 = vmax.f32 %v92_v43, %v93_v51  ;;  %v133_v59 = vunpack.c.l.s4 %v1490_v58  ;;  %v1555_v60 = vshrl.u32 %v135_v2, 7  ;;  %v108_v61 = vadd.f32 %v107_v53, %v106_v45  ;;  %s1578_s12 = sld [smem:[#allocation9 + $0x57]] }
  0x3b   :  { %v115_v62 = vadd.f32 %v114_v54, %v113_v46  ;;  %v121_v63 = vrot.slane %v120_v55, 1  ;;  %v123_v0 = vmul.f32 0.25, %v101_v52  ;;  %v131_v1 = vcombine.low %v73_v48, %v80_v56  ;;  %s1582_s13 = sld [smem:[#allocation9 + $0x18]] }
  0x3c   :  { %v134_v3 = vunpack.c.0.s8 %v133_v59  ;;  %v139_v4 = vcombine.low %v87_v50, %v94_v57  ;;  %v124_v6 = vmul.f32 0.25, %v108_v61  ;;  %vm154_vm2 = vcmask 1043459   ;;  %s1585_s14 = sld [smem:[#allocation9 + $0x49]] }
  0x3d   :  { %v122_v5 = vadd.f32 %v121_v63, %v120_v55  ;;  %v125_v7 = vmul.f32 0.25, %v115_v62  ;;  %vm156_vm3 = vcmask 1045509   ;;  %vm158_vm4 = vcmask 1047559   ;;  %s1588_s17 = sld [smem:[#allocation9 + $0x27]] }
  0x3e   :  { %v1566_v2 = vsub.s32 %v134_v3, %v1555_v60  ;;  %v166_v9 = vcombine.low %v123_v0, %v124_v6  ;;  %s1591_s18 = sld [smem:[#allocation9 + $0x58]]  ;;  %v258_v25 = vstv %s1544_s1  ;;  %v227_v26 = vstv %s1548_s28 }
  0x3f   :  { %v126_v8 = vmul.f32 0.25, %v122_v5  ;;  %s1594_s19 = sld [smem:[#allocation9 + $0x19]]  ;;  %v401_v30 = vstv %s1552_s30  ;;  %v260_v31 = vstv %s1546_s27  ;;  %v229_v32 = vstv %s1550_s29  ;;  %s1491_s29 = smov 64  }
  0x40   :  { %v138_v10 = vrot.slane %v131_v1, %v1566_v2  ;;  %v146_v11 = vrot.slane %v139_v4, %v1566_v2  ;;  %v173_v14 = vrot.slane %v166_v9, %v1566_v2  ;;  %s1597_s20 = sld [smem:[#allocation9 + $0x4a]]  ;;  %v403_v33 = vstv %s1557_s4  ;;  %s1492_s30 = smov 96  }
  0x41   :  { %v174_v12 = vcombine.low %v125_v7, %v126_v8  ;;  %s1600_s21 = sld [smem:[#allocation9 + $0x28]]  ;;  %v371_v35 = vstv %s1559_s5  ;;  %v373_v38 = vstv %s1561_s6  ;;  %v543_v44 = vstv %s1563_s7 }
  0x42   :  { %v151_v13 = vrot.slane %v146_v11, 7  ;;  %s1602_s22 = sld [smem:[#allocation9 + $0x59]]  ;;  %v545_v45 = vstv %s1568_s8  ;;  %v513_v46 = vstv %s1570_s9  ;;  %v515_v56 = vstv %s1574_s10 }
  0x43   :  { %v181_v15 = vrot.slane %v174_v12, %v1566_v2  ;;  %s1604_s23 = sld [smem:[#allocation9 + $0x1a]]  ;;  %v687_v59 = vstv %s1576_s11  ;;  %v689_v0 = vstv %s1578_s12  ;;  %v657_v8 = vstv %s1582_s13 }
  0x44   :  { %v153_v16 = vsel %vm152_vm1, %v151_v13, %v138_v10  ;;  %s1606_s24 = sld [smem:[#allocation9 + $0x4b]]  ;;  %v659_v10 = vstv %s1585_s14  ;;  %vm221_vm5 = vcmask 785408   ;;  %vm252_vm6 = vcmask 523264  }
  0x45   :  { %v155_v17 = vsel %vm154_vm2, %v151_v13, %v153_v16  ;;  %v184_v18 = vrot.slane %v181_v15, 7  ;;  %s1608_s25 = sld [smem:[#allocation9 + $0x29]]  ;;  %vm281_vm7 = vcmask 261120   ;;  %vm290_vm8 = vcmask 916480  }
  0x46   :  { %v157_v19 = vsel %vm156_vm3, %v151_v13, %v155_v17  ;;  %s1612_s26 = sld [smem:[#allocation9 + $0x5a]]  ;;  %vm470_vm9 = vcmask 408576   ;;  %vm328_vm10 = vcmask 416768   ;;  %vm612_vm11 = vcmask 400384  }
  0x47   :  { %v159_v20 = vsel %vm158_vm4, %v151_v13, %v157_v19  ;;  %v185_v21 = vsel %vm152_vm1, %v184_v18, %v173_v14  ;;  %s1627_s0 = sld [smem:[#allocation9 + $0x1b]]  ;;  %v829_v14 = vstv %s1588_s17  ;;  %v801_v19 = vstv %s1594_s19 }
  0x48   :  { %161 = vst [vmem:[#allocation2 + $0x2] sm:$0xf] %v159_v20  ;;  %v186_v22 = vsel %vm154_vm2, %v184_v18, %v185_v21  ;;  %s1634_s2 = sld [smem:[#allocation9 + $0x4c]]  ;;  %v831_v21 = vstv %s1591_s18  ;;  %vm756_vm12 = vcmask 392192   ;;  %vm898_vm13 = vcmask 384000  }
  0x49   :  { %v187_v23 = vsel %vm156_vm3, %v184_v18, %v186_v22  ;;  %s1660_s1 = sld [smem:[#allocation9 + $0xf]]  ;;  %v803_v22 = vstv %s1597_s20  ;;  %vm1182_vm14 = vcmask 367616   ;;  %vm1040_vm15 = vcmask 375808  }
  0x4a   :  { %v188_v24 = vsel %vm158_vm4, %v184_v18, %v187_v23  ;;  %s1663_s27 = sld [smem:[#allocation9 + $0x40]]  ;;  %v971_v23 = vstv %s1600_s21 }
  0x4b   :  { %191 = vst [vmem:[#allocation2 + $0xa] sm:$0xf] %v188_v24  ;;  %s1669_s28 = sld [smem:[#allocation9 + $0xe]] }
  0x4c   :  { %s1680_s4 = sld [smem:[#allocation9 + $0x3f]] }
  0x4d   :  { %s1682_s5 = sld [smem:[#allocation9 + $0x1d]] }
  0x4e   :  { %s1687_s6 = sld [smem:[#allocation9 + $0x4e]] }
  0x4f   :  { %v1614_v27 = vld [vmem:[#allocation2 + $0x2] sm:$0x3f]  ;;  %s1694_s7 = sld [smem:[#allocation9 + $0x1c]] }
  0x50   :  { %v1616_v28 = vld [vmem:[#allocation2] sm:$0x3f]  ;;  %v259_v36 = vmul.f32 %v258_v25, %v1614_v27  ;;  %s1700_s8 = sld [smem:[#allocation9 + $0x4d]] }
  0x51   :  { %v1618_v29 = vld [vmem:[#allocation2 + $0x2] sm:$0x3f]  ;;  %v228_v37 = vmul.f32 %v227_v26, %v1616_v28  ;;  %s1703_s9 = sld [smem:[#allocation9 + $0x2a]] }
  0x52   :  { %v1624_v34 = vld [vmem:[#allocation2] sm:$0x3f]  ;;  %v1636_v40 = vld [vmem:[#allocation2 + $0xa] sm:$0x3f]  ;;  %v402_v43 = vmul.f32 %v401_v30, %v1618_v29  ;;  %v973_v30 = vstv %s1602_s22  ;;  %s1708_s10 = sld [smem:[#allocation9 + $0x5b]] }
  0x53   :  { %v1632_v39 = vld [vmem:[#allocation2 + $0x2] sm:$0x3f]  ;;  %v1638_v41 = vld [vmem:[#allocation2 + $0x8] sm:$0x3f]  ;;  %v261_v47 = vmul.f32 %v260_v31, %v1636_v40  ;;  %v372_v51 = vmul.f32 %v371_v35, %v1624_v34  ;;  %s1719_s11 = sld [smem:[#allocation9 + $0x10]] }
  0x54   :  { %v1640_v42 = vld [vmem:[#allocation2 + $0xa] sm:$0x3f]  ;;  %v230_v48 = vmul.f32 %v229_v32, %v1638_v41  ;;  %v1654_v53 = vld [vmem:[#allocation2] sm:$0x3f]  ;;  %v544_v61 = vmul.f32 %v543_v44, %v1632_v39  ;;  %s1722_s12 = sld [smem:[#allocation9 + $0x41]] }
  0x55   :  { %v404_v49 = vmul.f32 %v403_v33, %v1640_v42  ;;  %v1649_v50 = vld [vmem:[#allocation2 + $0x8] sm:$0x3f]  ;;  %v262_v57 = vadd.f32 %v261_v47, %v259_v36  ;;  %v514_v63 = vmul.f32 %v513_v46, %v1654_v53  ;;  %v1674_v5 = vld [vmem:[#allocation2 + $0x2] sm:$0x3f]  ;;  %s1724_s13 = sld [smem:[#allocation9 + $0x1e]]  ;;  %v1113_v46 = vstv %s1608_s25 }
  0x56   :  { %v1652_v52 = vld [vmem:[#allocation2 + $0xa] sm:$0x3f]  ;;  %v374_v54 = vmul.f32 %v373_v38, %v1649_v50  ;;  %v231_v58 = vadd.f32 %v230_v48, %v228_v37  ;;  %v653_v7 = vld [vmem:[#allocation2 + $0x2] sm:$0xf]  ;;  %v688_v11 = vmul.f32 %v687_v59, %v1674_v5  ;;  %v943_v37 = vstv %s1604_s23  ;;  %s1730_s14 = sld [smem:[#allocation9 + $0x4f]] }
  0x57   :  { %v1657_v55 = vld [vmem:[#allocation2 + $0x8] sm:$0x3f]  ;;  %v546_v62 = vmul.f32 %v545_v45, %v1652_v52  ;;  %264 = vrot.lane.b32.xlu1 %v262_v57, %s1491_s29  ;;  %v405_v1 = vadd.f32 %v404_v49, %v402_v43  ;;  %v658_v13 = vmul.f32 %v657_v8, %v653_v7  ;;  %v1691_v18 = vld [vmem:[#allocation2 + $0x2] sm:$0x3f]  ;;  %v945_v38 = vstv %s1606_s24  ;;  %s1740_s17 = sld [smem:[#allocation9 + $0x2b]] }
  0x58   :  { %233 = vrot.lane.b32.xlu0 %v231_v58, %s1492_s30  ;;  %v375_v3 = vadd.f32 %v374_v54, %v372_v51  ;;  %v516_v4 = vmul.f32 %v515_v56, %v1657_v55  ;;  %v1676_v6 = vld [vmem:[#allocation2 + $0xa] sm:$0x3f]  ;;  %v830_v25 = vmul.f32 %v829_v14, %v1691_v18  ;;  %v802_v26 = vmul.f32 %v801_v19, %v1691_v18  ;;  %v1714_v35 = vld [vmem:[#allocation2 + $0x2] sm:$0x3f]  ;;  %s1744_s18 = sld [smem:[#allocation9 + $0x5c]] }
  0x59   :  { %v654_v9 = vld [vmem:[#allocation2 + $0xa] sm:$0xf]  ;;  %v690_v12 = vmul.f32 %v689_v0, %v1676_v6  ;;  %v547_v15 = vadd.f32 %v546_v62, %v544_v61  ;;  %v972_v43 = vmul.f32 %v971_v23, %v1714_v35  ;;  %v944_v45 = vmul.f32 %v943_v37, %v1714_v35  ;;  %v1735_v51 = vld [vmem:[#allocation2 + $0x2] sm:$0x3f]  ;;  %s1749_s19 = sld [smem:[#allocation9 + $0x2c]] }
  0x5a   :  { %v517_v16 = vadd.f32 %v516_v4, %v514_v63  ;;  %v660_v17 = vmul.f32 %v659_v10, %v654_v9  ;;  %v1696_v20 = vld [vmem:[#allocation2 + $0xa] sm:$0x3f]  ;;  %v1115_v56 = vstv %s1612_s26  ;;  %v1085_v57 = vstv %s1627_s0  ;;  %s1754_s20 = sld [smem:[#allocation9 + $0x5d]] }
  0x5b   :  { %407 = vrot.lane.b32.xlu1 %v405_v1, %s1491_s29  ;;  %v691_v24 = vadd.f32 %v690_v12, %v688_v11  ;;  %v832_v32 = vmul.f32 %v831_v21, %v1696_v20  ;;  %v804_v33 = vmul.f32 %v803_v22, %v1696_v20  ;;  %v1716_v36 = vld [vmem:[#allocation2 + $0xa] sm:$0x3f]  ;;  %v1087_v58 = vstv %s1634_s2  ;;  %s1760_s21 = sld [smem:[#allocation9 + $0x12]] }
  0x5c   :  { %377 = vrot.lane.b32.xlu0 %v375_v3, %s1492_s30  ;;  %v661_v31 = vadd.f32 %v660_v17, %v658_v13  ;;  %v974_v44 = vmul.f32 %v973_v30, %v1716_v36  ;;  %v946_v49 = vmul.f32 %v945_v38, %v1716_v36  ;;  %v1737_v54 = vld [vmem:[#allocation2 + $0xa] sm:$0x3f]  ;;  %v357_v59 = vstv %s1660_s1  ;;  %s1762_s22 = sld [smem:[#allocation9 + $0x43]] }
  0x5d   :  { %v833_v47 = vadd.f32 %v832_v32, %v830_v25  ;;  %v805_v48 = vadd.f32 %v804_v33, %v802_v26  ;;  %v359_v61 = vstv %s1663_s27  ;;  %v212_v62 = vstv %s1669_s28  ;;  %s1768_s23 = sld [smem:[#allocation9 + $0x11]] }
  0x5e   :  { %v975_v63 = vadd.f32 %v974_v44, %v972_v43  ;;  %v1114_v0 = vmul.f32 %v1113_v46, %v1735_v51  ;;  %v1116_v1 = vmul.f32 %v1115_v56, %v1737_v54  ;;  %v214_v3 = vstv %s1680_s4  ;;  %s1771_s24 = sld [smem:[#allocation9 + $0x42]] }
  0x5f   :  { %549 = vrot.lane.b32.xlu1 %v547_v15, %s1491_s29  ;;  %v947_v4 = vadd.f32 %v946_v49, %v944_v45  ;;  %v1086_v7 = vmul.f32 %v1085_v57, %v1735_v51  ;;  %v1088_v8 = vmul.f32 %v1087_v58, %v1737_v54  ;;  %v358_v9 = vmul.f32 %v357_v59, %v1624_v34  ;;  %s1775_s25 = sld [smem:[#allocation9 + $0x2d]] }
  0x60   :  { %519 = vrot.lane.b32.xlu0 %v517_v16, %s1492_s30  ;;  %v360_v10 = vmul.f32 %v359_v61, %v1649_v50  ;;  %v213_v11 = vmul.f32 %v212_v62, %v1616_v28  ;;  %v215_v12 = vmul.f32 %v214_v3, %v1638_v41  ;;  %v387_v13 = vstv %s1682_s5  ;;  %s1780_s26 = sld [smem:[#allocation9 + $0x5e]] }
  0x61   :  { %v1117_v14 = vadd.f32 %v1116_v1, %v1114_v0  ;;  %v1089_v15 = vadd.f32 %v1088_v8, %v1086_v7  ;;  %v389_v16 = vstv %s1687_s6  ;;  %v243_v17 = vstv %s1694_s7  ;;  %s1783_s0 = sld [smem:[#allocation9 + $0x1f]]  ;;  %v1826_v0 = vld [vmem:[#allocation2] sm:$0x3f] }
  0x62   :  { %v245_v19 = vstv %s1700_s8  ;;  %v361_v21 = vadd.f32 %v360_v10, %v358_v9  ;;  %v216_v22 = vadd.f32 %v215_v12, %v213_v11  ;;  %v388_v23 = vmul.f32 %v387_v13, %v1618_v29  ;;  %s1789_s2 = sld [smem:[#allocation9 + $0x50]]  ;;  %v1843_v9 = vld [vmem:[#allocation2 + $0x8] sm:$0x3f] }
  0x63   :  { %693 = vrot.lane.b32.xlu1 %v691_v24, %s1491_s29  ;;  %v272_v24 = vstv %s1703_s9  ;;  %v274_v25 = vstv %s1708_s10  ;;  %v499_v26 = vstv %s1719_s11  ;;  %v244_v32 = vmul.f32 %v243_v17, %v1614_v27  ;;  %s1796_s1 = sld [smem:[#allocation9 + $0x13]] }
  0x64   :  { %663 = vrot.lane.b32.xlu0 %v661_v31, %s1492_s30  ;;  %v501_v30 = vstv %s1722_s12  ;;  %v390_v31 = vmul.f32 %v389_v16, %v1640_v42  ;;  %v246_v33 = vmul.f32 %v245_v19, %v1636_v40  ;;  %s1798_s27 = sld [smem:[#allocation9 + $0x44]]  ;;  %v273_v37 = vmul.f32 %v272_v24, %v1614_v27 }
  0x65   :  { %v275_v38 = vmul.f32 %v274_v25, %v1636_v40  ;;  %v500_v43 = vmul.f32 %v499_v26, %v1654_v53  ;;  %v502_v44 = vmul.f32 %v501_v30, %v1657_v55  ;;  %s1804_s28 = sld [smem:[#allocation9 + $0x2e]]  ;;  %v529_v45 = vstv %s1724_s13  ;;  %s1493_s13 = smov 32   ;;  %v1870_v26 = vld [vmem:[#allocation2] sm:$0x3f]  ;;  %v1872_v30 = vld [vmem:[#allocation2 + $0x8] sm:$0x3f] }
  0x66   :  { %v531_v46 = vstv %s1730_s14  ;;  %s1810_s4 = sld [smem:[#allocation9 + $0x5f]]  ;;  %v391_v27 = vadd.f32 %v390_v31, %v388_v23  ;;  %v247_v49 = vadd.f32 %v246_v33, %v244_v32  ;;  %v557_v40 = vstv %s1749_s19 }
  0x67   :  { %835 = vrot.lane.b32.xlu1 %v833_v47, %s1491_s29  ;;  %v415_v47 = vstv %s1740_s17  ;;  %s1814_s5 = sld [smem:[#allocation9 + $0x20]]  ;;  %v559_v56 = vstv %s1754_s20  ;;  %v530_v57 = vmul.f32 %v529_v45, %v1632_v39  ;;  %v532_v58 = vmul.f32 %v531_v46, %v1652_v52 }
  0x68   :  { %807 = vrot.lane.b32.xlu0 %v805_v48, %s1492_s30  ;;  %v417_v48 = vstv %s1744_s18  ;;  %s1818_s6 = sld [smem:[#allocation9 + $0x51]]  ;;  %v416_v59 = vmul.f32 %v415_v47, %v1618_v29  ;;  %v276_v62 = vadd.f32 %v275_v38, %v273_v37  ;;  %v785_v1 = vstv %s1760_s21 }
  0x69   :  { %v418_v61 = vmul.f32 %v417_v48, %v1640_v42  ;;  %s1824_s7 = sld [smem:[#allocation9 + $0x8]]  ;;  %v558_v3 = vmul.f32 %v557_v40, %v1632_v39  ;;  %v560_v29 = vmul.f32 %v559_v56, %v1652_v52  ;;  %v1835_v42 = vld [vmem:[#allocation2] sm:$0x3f]  ;;  %v641_v7 = vstv %s1768_s23 }
  0x6a   :  { %s1829_s8 = sld [smem:[#allocation9 + $0x39]]  ;;  %v643_v8 = vstv %s1771_s24  ;;  %v787_v10 = vstv %s1762_s22  ;;  %v533_v11 = vadd.f32 %v532_v58, %v530_v57  ;;  %v786_v52 = vmul.f32 %v785_v1, %v1826_v0 }
  0x6b   :  { %977 = vrot.lane.b32.xlu1 %v975_v63, %s1491_s29  ;;  %v503_v63 = vadd.f32 %v502_v44, %v500_v43  ;;  %s1841_s9 = sld [smem:[#allocation9 + $0x14]]  ;;  %v419_v39 = vadd.f32 %v418_v61, %v416_v59  ;;  %v642_v12 = vmul.f32 %v641_v7, %v1835_v42  ;;  %v788_v16 = vmul.f32 %v787_v10, %v1843_v9 }
  0x6c   :  { %949 = vrot.lane.b32.xlu0 %v947_v4, %s1492_s30  ;;  %v1837_v4 = vld [vmem:[#allocation2 + $0x8] sm:$0x3f]  ;;  %s1846_s10 = sld [smem:[#allocation9 + $0x45]]  ;;  %v703_v17 = vstv %s1780_s26  ;;  %v927_v31 = vstv %s1796_s1  ;;  %v929_v32 = vstv %s1798_s27 }
  0x6d   :  { %s1848_s11 = sld [smem:[#allocation9 + $0x21]]  ;;  %v644_v13 = vmul.f32 %v643_v8, %v1837_v4  ;;  %v704_v38 = vmul.f32 %v703_v17, %v1676_v6  ;;  %v815_v43 = vstv %s1814_s5  ;;  %v928_v48 = vmul.f32 %v927_v31, %v1870_v26 }
  0x6e   :  { %s1854_s12 = sld [smem:[#allocation9 + $0x52]]  ;;  %v817_v44 = vstv %s1818_s6  ;;  %v816_v40 = vmul.f32 %v815_v43, %v1691_v18 }
  0x6f   :  { %1119 = vrot.lane.b32.xlu1 %v1117_v14, %s1491_s29  ;;  %v701_v14 = vstv %s1775_s25  ;;  %v349_v19 = vstv %s1824_s7  ;;  %s1861_s14 = sld [smem:[#allocation9 + $0x22]]  ;;  %v645_v37 = vadd.f32 %v644_v13, %v642_v12  ;;  %v818_v56 = vmul.f32 %v817_v44, %v1696_v20 }
  0x70   :  { %1091 = vrot.lane.b32.xlu0 %v1089_v15, %s1492_s30  ;;  %v561_v15 = vadd.f32 %v560_v29, %v558_v3  ;;  %v350_v23 = vmul.f32 %v349_v19, %v1624_v34  ;;  %v351_v24 = vstv %s1829_s8  ;;  %s1867_s17 = sld [smem:[#allocation9 + $0x53]]  ;;  %v702_v25 = vmul.f32 %v701_v14, %v1674_v5 }
  0x71   :  { %v352_v33 = vmul.f32 %v351_v24, %v1649_v50  ;;  %s1877_s18 = sld [smem:[#allocation9 + $0xa]]  ;;  %v819_v8 = vadd.f32 %v818_v56, %v816_v40 }
  0x72   :  { %s1882_s19 = sld [smem:[#allocation9 + $0x3b]]  ;;  %v705_v58 = vadd.f32 %v704_v38, %v702_v25 }
  0x73   :  { %363 = vrot.lane.b32.xlu1 %v361_v21, %s1492_s30  ;;  %v673_v21 = vstv %s1783_s0  ;;  %v1888_v47 = vadd.f32 %v352_v33, %v350_v23  ;;  %s1890_s20 = sld [smem:[#allocation9 + $0x2f]]  ;;  %v957_v57 = vstv %s1848_s11  ;;  %v1049_v33 = vld [vmem:[#allocation2] sm:$0x3f] }
  0x74   :  { %218 = vrot.lane.b32.xlu0 %v216_v22, %s1492_s30  ;;  %v675_v22 = vstv %s1789_s2  ;;  %v674_v45 = vmul.f32 %v673_v21, %v1674_v5  ;;  %s1894_s21 = sld [smem:[#allocation9 + $0x60]]  ;;  %v789_v5 = vadd.f32 %v788_v16, %v786_v52  ;;  %v959_v61 = vstv %s1854_s12 }
  0x75   :  { %v676_v46 = vmul.f32 %v675_v22, %v1676_v6  ;;  %s1899_s22 = sld [smem:[#allocation9 + $0xb]]  ;;  %v845_v6 = vstv %s1810_s4  ;;  %v1069_v16 = vstv %s1841_s9  ;;  %v1071_v21 = vstv %s1846_s10 }
  0x76   :  { %s1903_s23 = sld [smem:[#allocation9 + $0x3c]]  ;;  %v846_v7 = vmul.f32 %v845_v6, %v1696_v20  ;;  %v1099_v20 = vstv %s1861_s14  ;;  %v1101_v17 = vstv %s1867_s17  ;;  %s1494_s17 = smov 112  }
  0x77   :  { %393 = vrot.lane.b32.xlu1 %v391_v27, %s1491_s29  ;;  %v930_v27 = vmul.f32 %v929_v32, %v1872_v30  ;;  %v677_v59 = vadd.f32 %v676_v46, %v674_v45  ;;  %s1909_s24 = sld [smem:[#allocation9 + $0xc]]  ;;  %v1100_v25 = vmul.f32 %v1099_v20, %v1735_v51  ;;  %v1102_v38 = vmul.f32 %v1101_v17, %v1737_v54 }
  0x78   :  { %249 = vrot.lane.b32.xlu0 %v247_v49, %s1491_s29  ;;  %v843_v49 = vstv %s1804_s28  ;;  %v635_v29 = vstv %s1882_s19  ;;  %s1914_s25 = sld [smem:[#allocation9 + $0x3d]] }
  0x79   :  { %v844_v1 = vmul.f32 %v843_v49, %v1691_v18  ;;  %v636_v10 = vmul.f32 %v635_v29, %v1837_v4  ;;  %s1919_s26 = sld [smem:[#allocation9 + $0xd]]  ;;  %v958_v18 = vmul.f32 %v957_v57, %v1714_v35 }
  0x7a   :  { %v987_v12 = vstv %s1894_s21  ;;  %s1925_s0 = sld [smem:[#allocation9 + $0x3e]] }
  0x7b   :  { %278 = vrot.lane.b32.xlu1 %v276_v62, %s1493_s13  ;;  %v633_v62 = vstv %s1877_s18  ;;  %v988_v14 = vmul.f32 %v987_v12, %v1716_v36  ;;  %s1934_s2 = sld [smem:[#allocation9 + $0x30]] }
  0x7c   :  { %505 = vrot.lane.b32.xlu0 %v503_v63, %s1492_s30  ;;  %v931_v63 = vadd.f32 %v930_v27, %v928_v48  ;;  %v634_v3 = vmul.f32 %v633_v62, %v1835_v42  ;;  %v779_v19 = vstv %s1903_s23  ;;  %s1940_s1 = sld [smem:[#allocation9 + $0x61]]  ;;  %v847_v27 = vadd.f32 %v846_v7, %v844_v1  ;;  %s1497_s23 = smov 49  }
  0x7d   :  { %v780_v23 = vmul.f32 %v779_v19, %v1843_v9  ;;  %v919_v24 = vstv %s1909_s24  ;;  %s1947_s27 = sld [smem:[#allocation9 + $0x1]]  ;;  %s1498_s24 = smov 48  }
  0x7e   :  { %v1930_v13 = vadd.f32 %v636_v10, %v634_v3  ;;  %v920_v31 = vmul.f32 %v919_v24, %v1870_v26  ;;  %v921_v32 = vstv %s1914_s25  ;;  %s1289_s28 = sld [smem:[#allocation9 + $0x32]]  ;;  %s1499_s25 = smov 47  }
  0x7f   :  { %535 = vrot.lane.b32.xlu1 %v533_v11, %s1491_s29  ;;  %v985_v11 = vstv %s1890_s20  ;;  %v922_v44 = vmul.f32 %v921_v32, %v1872_v30  ;;  %v1061_v45 = vstv %s1919_s26  ;;  %s1330_s4 = sld [smem:[#allocation9 + $0x4]]  ;;  %s1500_s26 = smov 46  }
  0x80   :  { %421 = vrot.lane.b32.xlu0 %v419_v39, %s1493_s13  ;;  %v960_v39 = vmul.f32 %v959_v61, %v1716_v36  ;;  %v986_v52 = vmul.f32 %v985_v11, %v1714_v35  ;;  %v1062_v46 = vmul.f32 %v1061_v45, %v1049_v33  ;;  %v1063_v48 = vstv %s1925_s0  ;;  %s1331_s5 = sld [smem:[#allocation9 + $0x35]]  ;;  %s1501_s0 = smov 45  }
  0x81   :  { %v1960_v49 = vadd.f32 %v922_v44, %v920_v31  ;;  %v1127_v56 = vstv %s1934_s2  ;;  %s1316_s6 = sld [smem:[#allocation9 + $0x3]]  ;;  %s1503_s2 = smov [#allocation10]  }
  0x82   :  { %v1943_v22 = vadd.f32 %v988_v14, %v986_v52  ;;  %v961_v36 = vadd.f32 %v960_v39, %v958_v18  ;;  %v1128_v57 = vmul.f32 %v1127_v56, %v1735_v51  ;;  %s1317_s7 = sld [smem:[#allocation9 + $0x34]] }
  0x83   :  { %563 = vrot.lane.b32.xlu1 %v561_v15, %s1493_s13  ;;  %v777_v15 = vstv %s1899_s22  ;;  %v341_v3 = vstv %s1947_s27  ;;  %s1344_s8 = sld [smem:[#allocation9 + $0x5]]  ;;  %s1496_s22 = smov 50  }
  0x84   :  { %647 = vrot.lane.b32.xlu0 %v645_v37, %s1492_s30  ;;  %v778_v35 = vmul.f32 %v777_v15, %v1826_v0  ;;  %v1050_v37 = vld [vmem:[#allocation2 + $0x8] sm:$0x3f]  ;;  %v343_v1 = vstv %s1289_s28  ;;  %v342_v29 = vmul.f32 %v341_v3, %v1624_v34  ;;  %s1345_s9 = sld [smem:[#allocation9 + $0x36]] }
  0x85   :  { %v1064_v40 = vmul.f32 %v1063_v48, %v1050_v37  ;;  %v1072_v6 = vmul.f32 %v1071_v21, %v1050_v37  ;;  %v344_v51 = vmul.f32 %v343_v1, %v1649_v50  ;;  %s1358_s10 = sld [smem:[#allocation9 + $0x6]] }
  0x86   :  { %v1955_v43 = vadd.f32 %v780_v23, %v778_v35  ;;  %v771_v10 = vstv %s1331_s5  ;;  %s1359_s11 = sld [smem:[#allocation9 + $0x37]] }
  0x87   :  { %791 = vrot.lane.b32.xlu1 %v789_v5, %s1492_s30  ;;  %v1070_v5 = vmul.f32 %v1069_v16, %v1049_v33  ;;  %v1967_v61 = vadd.f32 %v1064_v40, %v1062_v46  ;;  %v772_v50 = vmul.f32 %v771_v10, %v1843_v9  ;;  %v625_v11 = vstv %s1316_s6  ;;  %s1304_s12 = sld [smem:[#allocation9 + $0x9]] }
  0x88   :  { %679 = vrot.lane.b32.xlu0 %v677_v59, %s1491_s29  ;;  %v1103_v59 = vadd.f32 %v1102_v38, %v1100_v25  ;;  %v626_v18 = vmul.f32 %v625_v11, %v1835_v42  ;;  %v627_v39 = vstv %s1317_s7  ;;  %s1305_s14 = sld [smem:[#allocation9 + $0x3a]] }
  0x89   :  { %v628_v12 = vmul.f32 %v627_v39, %v1837_v4  ;;  %v911_v20 = vstv %s1344_s8  ;;  %s2008_s18 = sld [smem:[#allocation9]] }
  0x8a   :  { %v912_v14 = vmul.f32 %v911_v20, %v1870_v26  ;;  %v913_v15 = vstv %s1345_s9  ;;  %s1275_s19 = sld [smem:[#allocation9 + $0x31]] }
  0x8b   :  { %707 = vrot.lane.b32.xlu1 %v705_v58, %s1493_s13  ;;  %v1129_v58 = vstv %s1940_s1  ;;  %v1987_v16 = vadd.f32 %v628_v12, %v626_v18  ;;  %v1053_v17 = vstv %s1358_s10  ;;  %s2019_s20 = sld [smem:[#allocation9 + $0x2]]  ;;  %s1261_s1 = sshll.u32 %s1503_s2, 4  ;;  %s1262_s1 = int_to_ptr.vmem [resolvable:$true] %s1261_s1 }
  0x8c   :  { %821 = vrot.lane.b32.xlu0 %v819_v8, %s1491_s29  ;;  %v1130_v62 = vmul.f32 %v1129_v58, %v1737_v54  ;;  %v1977_v8 = vadd.f32 %v344_v51, %v342_v29  ;;  %v769_v54 = vstv %s1330_s4  ;;  %v1054_v35 = vmul.f32 %v1053_v17, %v1049_v33  ;;  %s2022_s21 = sld [smem:[#allocation9 + $0x33]]  ;;  %s1456_s27 = scalar_lea.vmem %s1262_s1, 256 }
  0x8d   :  { %v770_v34 = vmul.f32 %v769_v54, %v1826_v0  ;;  %v914_v0 = vmul.f32 %v913_v15, %v1872_v30  ;;  %v1055_v19 = vstv %s1359_s11  ;;  %v491_v33 = vstv %s1304_s12  ;;  %p1457_p1 = scmp.ne.s32.totalorder %s1262_s1, %s1456_s27  ;;  %p1461_p2 = scmp.lt.s32.totalorder %s1262_s1, %s1262_s1 }
  0x8e   :  { %v1972_v7 = vadd.f32 %v1130_v62, %v1128_v57  ;;  %v1056_v21 = vmul.f32 %v1055_v19, %v1050_v37  ;;  %v493_v37 = vstv %s1305_s14  ;;  %v492_v48 = vmul.f32 %v491_v33, %v1654_v53  ;;  %p1462_p3 = scmp.lt.s32.totalorder %s1456_s27, %s1456_s27 }
  0x8f   :  { %933 = vrot.lane.b32.xlu1 %v931_v63, %s1492_s30  ;;  %v1073_v63 = vadd.f32 %v1072_v6, %v1070_v5  ;;  %v1983_v52 = vadd.f32 %v772_v50, %v770_v34  ;;  %v1990_v9 = vadd.f32 %v914_v0, %v912_v14 }
  0x90   :  { %963 = vrot.lane.b32.xlu0 %v961_v36, %s1491_s29  ;;  %v1992_v42 = vadd.f32 %v1056_v21, %v1054_v35  ;;  %p1463_p4 = por %p1462_p3, %p1461_p2 }
  0x92   :  { %p1464_p5 = pnand %p1463_p4, %p1457_p1 }
  0x93   :  { %849 = vrot.lane.b32.xlu1 %v847_v27, %s1493_s13  ;;  %v494_v27 = vmul.f32 %v493_v37, %v1657_v55 }
  0x94   :  { %1105 = vrot.lane.b32.xlu0 %v1103_v59, %s1491_s29  ;;  %s1276_s29 = sld [smem:[#allocation9 + $0x7]] }
  0x95   :  { %v495_v62 = vadd.f32 %v494_v27, %v492_v48 }
  0x97   :  { %1075 = vrot.lane.b32.xlu1 %v1073_v63, %s1492_s30  ;;  %s1277_s30 = sld [smem:[#allocation9 + $0x38]] }
  0x9a   :  { %v204_v4 = vstv %s1276_s29 }
  0x9b   :  { %v205_v24 = vmul.f32 %v204_v4, %v1616_v28 }
  0x9d   :  { %v206_v23 = vstv %s1277_s30 }
  0x9e   :  { %v207_v26 = vmul.f32 %v206_v23, %v1638_v41 }
  0xa0   :  { %v208_v25 = vadd.f32 %v207_v26, %v205_v24  ;;  %v196_v26 = vstv %s2008_s18 }
  0xc9   :  { %v265_v36 = vpop.permute.xlu1 %264 }
  0xca   :  { %v234_v30 = vpop.permute.xlu0 %233  ;;  %v266_v31 = vrot.slane %v265_v36, 6 }
  0xcb   :  { %v235_v32 = vrot.slane %v234_v30, 2 }
  0xcc   :  { %v267_v40 = vsel %vm252_vm6, %v266_v31, %v265_v36 }
  0xcd   :  { %v236_v38 = vsel %vm221_vm5, %v234_v30, %v235_v32  ;;  %v408_v45 = vpop.permute.xlu1 %407  ;;  %v198_v30 = vstv %s1275_s19 }
  0xce   :  { %v238_v44 = vadd.f32 %v236_v38, %v208_v25  ;;  %v378_v46 = vpop.permute.xlu0 %377  ;;  %v409_v56 = vrot.slane %v408_v45, 6  ;;  %v199_v37 = vmul.f32 %v198_v30, %v1638_v41  ;;  %v197_v38 = vmul.f32 %v196_v26, %v1616_v28 }
  0xcf   :  { %v379_v5 = vrot.slane %v378_v46, 2 }
  0xd0   :  { %v269_v6 = vadd.f32 %v267_v40, %v238_v44  ;;  %v410_v1 = vsel %vm252_vm6, %v409_v56, %v408_v45  ;;  %v200_v41 = vadd.f32 %v199_v37, %v197_v38 }
  0xd1   :  { %v380_v57 = vsel %vm221_vm5, %v378_v46, %v379_v5  ;;  %v550_v59 = vpop.permute.xlu1 %549  ;;  %v483_v5 = vstv %s2019_s20 }
  0xd2   :  { %v382_v58 = vadd.f32 %v380_v57, %v1888_v47  ;;  %v520_v3 = vpop.permute.xlu0 %519  ;;  %287 = vrot.lane.b32.xlu1 %v269_v6, %s1494_s17  ;;  %v551_v29 = vrot.slane %v550_v59, 6 }
  0xd3   :  { %v521_v51 = vrot.slane %v520_v3, 2 }
  0xd4   :  { %v412_v63 = vadd.f32 %v410_v1, %v382_v58  ;;  %v552_v47 = vsel %vm252_vm6, %v551_v29, %v550_v59  ;;  %v485_v58 = vstv %s2022_s21 }
  0xd5   :  { %v522_v54 = vsel %vm221_vm5, %v520_v3, %v521_v51  ;;  %v694_v10 = vpop.permute.xlu1 %693  ;;  %v484_v51 = vmul.f32 %v483_v5, %v1654_v53 }
  0xd6   :  { %v524_v34 = vadd.f32 %v522_v54, %v495_v62  ;;  %v664_v50 = vpop.permute.xlu0 %663  ;;  %430 = vrot.lane.b32.xlu0 %v412_v63, %s1494_s17  ;;  %991 = vrot.lane.b32.xlu1 %v1943_v22, %s1493_s13  ;;  %v695_v11 = vrot.slane %v694_v10, 6  ;;  %v486_v63 = vmul.f32 %v485_v58, %v1657_v55 }
  0xd7   :  { %v665_v18 = vrot.slane %v664_v50, 6 }
  0xd8   :  { %v554_v39 = vadd.f32 %v552_v47, %v524_v34  ;;  %v696_v0 = vsel %vm252_vm6, %v695_v11, %v694_v10 }
  0xd9   :  { %v666_v12 = vsel %vm221_vm5, %v665_v18, %v664_v50  ;;  %v836_v14 = vpop.permute.xlu1 %835 }
  0xda   :  { %v668_v20 = vadd.f32 %v666_v12, %v1930_v13  ;;  %v808_v15 = vpop.permute.xlu0 %807  ;;  %572 = vrot.lane.b32.xlu0 %v554_v39, %s1494_s17  ;;  %v837_v22 = vrot.slane %v836_v14, 6  ;;  %v487_v39 = vadd.f32 %v486_v63, %v484_v51 }
  0xdb   :  { %v809_v17 = vrot.slane %v808_v15, 6 }
  0xdc   :  { %v698_v35 = vadd.f32 %v696_v0, %v668_v20  ;;  %v838_v13 = vsel %vm252_vm6, %v837_v22, %v836_v14 }
  0xdd   :  { %v810_v19 = vsel %vm221_vm5, %v809_v17, %v808_v15  ;;  %v978_v4 = vpop.permute.xlu1 %977 }
  0xde   :  { %v812_v21 = vadd.f32 %v810_v19, %v1955_v43  ;;  %v950_v23 = vpop.permute.xlu0 %949  ;;  %716 = vrot.lane.b32.xlu0 %v698_v35, %s1494_s17  ;;  %v979_v24 = vrot.slane %v978_v4, 6 }
  0xdf   :  { %v951_v36 = vrot.slane %v950_v23, 6 }
  0xe0   :  { %v840_v25 = vadd.f32 %v838_v13, %v812_v21  ;;  %v980_v44 = vsel %vm252_vm6, %v979_v24, %v978_v4 }
  0xe1   :  { %v952_v31 = vsel %vm221_vm5, %v951_v36, %v950_v23  ;;  %v1120_v43 = vpop.permute.xlu1 %1119 }
  0xe2   :  { %v954_v32 = vadd.f32 %v952_v31, %v1960_v49  ;;  %v1092_v33 = vpop.permute.xlu0 %1091  ;;  %858 = vrot.lane.b32.xlu0 %v840_v25, %s1494_s17  ;;  %v1121_v45 = vrot.slane %v1120_v43, 6 }
  0xe3   :  { %v1093_v46 = vrot.slane %v1092_v33, 6 }
  0xe4   :  { %v982_v48 = vadd.f32 %v980_v44, %v954_v32  ;;  %v1122_v28 = vsel %vm252_vm6, %v1121_v45, %v1120_v43 }
  0xe5   :  { %v1094_v27 = vsel %vm221_vm5, %v1093_v46, %v1092_v33  ;;  %v364_v49 = vpop.permute.xlu1 %363 }
  0xe6   :  { %v1096_v40 = vadd.f32 %v1094_v27, %v1967_v61  ;;  %1133 = vrot.lane.b32.xlu0 %v1972_v7, %s1493_s13  ;;  %1000 = vrot.lane.b32.xlu1 %v982_v48, %s1494_s17  ;;  %v219_v56 = vpop.permute.xlu0 %218  ;;  %v365_v6 = vrot.slane %v364_v49, 2  ;;  %s1495_s13 = smov 51  }
  0xe7   :  { %v220_v57 = vrot.slane %v219_v56, 2 }
  0xe8   :  { %v1124_v59 = vadd.f32 %v1122_v28, %v1096_v40  ;;  %v366_v62 = vsel %vm221_vm5, %v364_v49, %v365_v6 }
  0xe9   :  { %v222_v3 = vsel %vm221_vm5, %v219_v56, %v220_v57  ;;  %v368_v61 = vadd.f32 %v366_v62, %v1977_v8  ;;  %v394_v1 = vpop.permute.xlu1 %393 }
  0xea   :  { %1142 = vrot.lane.b32.xlu1 %v1124_v59, %s1494_s17  ;;  %v224_v7 = vadd.f32 %v222_v3, %v200_v41  ;;  %v250_v29 = vpop.permute.xlu0 %249  ;;  %v395_v54 = vrot.slane %v394_v1, 6 }
  0xeb   :  { %v251_v34 = vrot.slane %v250_v29, 6 }
  0xec   :  { %v396_v10 = vsel %vm252_vm6, %v395_v54, %v394_v1 }
  0xed   :  { %v253_v50 = vsel %vm252_vm6, %v251_v34, %v250_v29  ;;  %v398_v47 = vadd.f32 %v396_v10, %v368_v61  ;;  %v279_v18 = vpop.permute.xlu1 %278 }
  0xee   :  { %v255_v11 = vadd.f32 %v253_v50, %v224_v7  ;;  %v506_v12 = vpop.permute.xlu0 %505  ;;  %v280_v62 = vrot.slane %v279_v18, 6 }
  0xef   :  { %v507_v20 = vrot.slane %v506_v12, 2 }
  0xf0   :  { %v282_v3 = vsel %vm281_vm7, %v280_v62, %v279_v18 }
  0xf1   :  { %v508_v8 = vsel %vm221_vm5, %v506_v12, %v507_v20  ;;  %v536_v15 = vpop.permute.xlu1 %535  ;;  %v284_v1 = vadd.f32 %v282_v3, %v255_v11 }
  0xf2   :  { %v510_v14 = vadd.f32 %v508_v8, %v487_v39  ;;  %v422_v0 = vpop.permute.xlu0 %421  ;;  %v537_v53 = vrot.slane %v536_v15, 6 }
  0xf4   :  { %v538_v55 = vsel %vm252_vm6, %v537_v53, %v536_v15 }
  0xf5   :  { %v540_v22 = vadd.f32 %v538_v55, %v510_v14  ;;  %v564_v17 = vpop.permute.xlu1 %563 }
  0xf6   :  { %v648_v35 = vpop.permute.xlu0 %647  ;;  %v565_v51 = vrot.slane %v564_v17, 6 }
  0xf7   :  { %v649_v19 = vrot.slane %v648_v35, 2 }
  0xf8   :  { %v566_v18 = vsel %vm281_vm7, %v565_v51, %v564_v17 }
  0xf9   :  { %v650_v21 = vsel %vm221_vm5, %v648_v35, %v649_v19  ;;  %v792_v4 = vpop.permute.xlu1 %791  ;;  %v568_v14 = vadd.f32 %v566_v18, %v540_v22 }
  0xfa   :  { %v652_v23 = vadd.f32 %v650_v21, %v1987_v16  ;;  %v680_v26 = vpop.permute.xlu0 %679  ;;  %v793_v13 = vrot.slane %v792_v4, 2 }
  0xfb   :  { %v681_v24 = vrot.slane %v680_v26, 6 }
  0xfc   :  { %v794_v36 = vsel %vm221_vm5, %v792_v4, %v793_v13 }
  0xfd   :  { %v682_v30 = vsel %vm252_vm6, %v681_v24, %v680_v26  ;;  %v796_v25 = vadd.f32 %v794_v36, %v1983_v52  ;;  %v708_v31 = vpop.permute.xlu1 %707 }
  0xfe   :  { %v684_v32 = vadd.f32 %v682_v30, %v652_v23  ;;  %v822_v43 = vpop.permute.xlu0 %821  ;;  %v709_v39 = vrot.slane %v708_v31, 6 }
  0xff   :  { %v823_v33 = vrot.slane %v822_v43, 6 }
 0x101   :  { %v824_v37 = vsel %vm252_vm6, %v823_v33, %v822_v43  ;;  %v934_v38 = vpop.permute.xlu1 %933 }
 0x102   :  { %v826_v44 = vadd.f32 %v824_v37, %v796_v25  ;;  %v964_v45 = vpop.permute.xlu0 %963  ;;  %v935_v46 = vrot.slane %v934_v38, 2 }
 0x103   :  { %v965_v16 = vrot.slane %v964_v45, 6 }
 0x104   :  { %v936_v48 = vsel %vm221_vm5, %v934_v38, %v935_v46 }
 0x105   :  { %v966_v27 = vsel %vm252_vm6, %v965_v16, %v964_v45  ;;  %v938_v40 = vadd.f32 %v936_v48, %v1990_v9  ;;  %v850_v49 = vpop.permute.xlu1 %849  ;;  %v423_v9 = vrot.slane %v422_v0, 6 }
 0x106   :  { %v1106_v56 = vpop.permute.xlu0 %1105 }
 0x107   :  { %v2057_v52 = vadd.f32 %v966_v27, %v938_v40  ;;  %v1107_v41 = vrot.slane %v1106_v56, 6  ;;  %v424_v29 = vsel %vm281_vm7, %v423_v9, %v422_v0  ;;  %v710_v0 = vsel %vm281_vm7, %v709_v39, %v708_v31 }
 0x108   :  { %v426_v10 = vadd.f32 %v424_v29, %v398_v47  ;;  %v851_v47 = vrot.slane %v850_v49, 6  ;;  %v712_v21 = vadd.f32 %v710_v0, %v684_v32 }
 0x109   :  { %v1076_v5 = vpop.permute.xlu1 %1075  ;;  %v1108_v57 = vsel %vm252_vm6, %v1107_v41, %v1106_v56 }
 0x10a   :  { %v1077_v28 = vrot.slane %v1076_v5, 2  ;;  %v852_v23 = vsel %vm281_vm7, %v851_v47, %v850_v49 }
 0x10b   :  { %v854_v30 = vadd.f32 %v852_v23, %v826_v44 }
 0x10c   :  { %v1078_v6 = vsel %vm221_vm5, %v1076_v5, %v1077_v28 }
 0x10d   :  { %v1080_v58 = vadd.f32 %v1078_v6, %v1992_v42 }
 0x10f   :  { %v2062_v59 = vadd.f32 %v1108_v57, %v1080_v58 }
 0x144   :  { %v288_v61 = vpop.permute.xlu1 %287 }
 0x145   :  { %v289_v7 = vrot.slane %v288_v61, 2 }
 0x147   :  { %v291_v63 = vsel %vm290_vm8, %v288_v61, %v289_v7 }
 0x148   :  { %v2067_v54 = vadd.f32 %v291_v63, %v284_v1  ;;  %v431_v34 = vpop.permute.xlu0 %430  ;;  %v992_v55 = vpop.permute.xlu1 %991 }
 0x149   :  { %v432_v42 = vrot.slane %v431_v34, 2  ;;  %v993_v22 = vrot.slane %v992_v55, 6 }
 0x14a   :  { %v313_v50 = vrot.slane %v2067_v54, %v1566_v2 }
 0x14b   :  { %v433_v12 = vsel %vm290_vm8, %v431_v34, %v432_v42  ;;  %v994_v31 = vsel %vm281_vm7, %v993_v22, %v992_v55 }
 0x14c   :  { %v435_v20 = vadd.f32 %v433_v12, %v426_v10  ;;  %v573_v11 = vpop.permute.xlu0 %572  ;;  %322 = vrot.lane.b32.xlu0 %v313_v50, %s1495_s13  ;;  %v996_v46 = vadd.f32 %v994_v31, %v2057_v52  ;;  %v306_v52 = vcombine.high %v2067_v54, %v2067_v54  ;;  %v321_v58 = vcombine.high %v313_v50, %v313_v50 }
 0x14d   :  { %v574_v8 = vrot.slane %v573_v11, 2 }
 0x14e   :  { %v455_v15 = vrot.slane %v435_v20, %v1566_v2  ;;  %v448_v6 = vcombine.high %v435_v20, %v435_v20  ;;  %v320_v62 = vrot.slane %v306_v52, %v1566_v2 }
 0x14f   :  { %v575_v53 = vsel %vm290_vm8, %v573_v11, %v574_v8 }
 0x150   :  { %v577_v35 = vadd.f32 %v575_v53, %v568_v14  ;;  %v717_v17 = vpop.permute.xlu0 %716  ;;  %464 = vrot.lane.b32.xlu1 %v455_v15, %s1496_s22  ;;  %v463_v7 = vcombine.high %v455_v15, %v455_v15 }
 0x151   :  { %v718_v19 = vrot.slane %v717_v17, 2 }
 0x152   :  { %v597_v4 = vrot.slane %v577_v35, %v1566_v2  ;;  %v590_v3 = vcombine.high %v577_v35, %v577_v35 }
 0x153   :  { %v719_v26 = vsel %vm290_vm8, %v717_v17, %v718_v19  ;;  %v428_v17 = vld [vmem:[#allocation7 + $0x1] ss:$8 sm:$0x3]  ;;  %v2125_v19 = vsub.s32 0, %v1555_v60 }
 0x154   :  { %v721_v13 = vadd.f32 %v719_v26, %v712_v21  ;;  %v859_v24 = vpop.permute.xlu0 %858  ;;  %606 = vrot.lane.b32.xlu0 %v597_v4, %s1497_s23  ;;  %v605_v61 = vcombine.high %v597_v4, %v597_v4  ;;  %v604_v29 = vrot.slane %v590_v3, %v1566_v2 }
 0x155   :  { %v860_v36 = vrot.slane %v859_v24, 2  ;;  %v440_v4 = vrot.slane %v428_v17, %v2125_v19 }
 0x156   :  { %v741_v25 = vrot.slane %v721_v13, %v1566_v2  ;;  %v734_v9 = vcombine.high %v721_v13, %v721_v13  ;;  %v570_v13 = vld [vmem:[#allocation7 + $0x2] ss:$8 sm:$0x3] }
 0x157   :  { %v861_v32 = vsel %vm290_vm8, %v859_v24, %v860_v36  ;;  %v714_v36 = vld [vmem:[#allocation7 + $0x3] ss:$8 sm:$0x3] }
 0x158   :  { %v863_v43 = vadd.f32 %v861_v32, %v854_v30  ;;  %v1134_v33 = vpop.permute.xlu0 %1133  ;;  %750 = vrot.lane.b32.xlu1 %v741_v25, %s1498_s24  ;;  %v1001_v37 = vpop.permute.xlu1 %1000  ;;  %v748_v1 = vrot.slane %v734_v9, %v1566_v2  ;;  %v749_v34 = vcombine.high %v741_v25, %v741_v25  ;;  %v2132_v30 = vsub.s32 1, %v1555_v60 }
 0x159   :  { %v1135_v38 = vrot.slane %v1134_v33, 6  ;;  %v1002_v45 = vrot.slane %v1001_v37, 2 }
 0x15a   :  { %v883_v16 = vrot.slane %v863_v43, %v1566_v2  ;;  %v876_v51 = vcombine.high %v863_v43, %v863_v43  ;;  %v582_v43 = vrot.slane %v570_v13, %v2125_v19 }
 0x15b   :  { %v1136_v44 = vsel %vm281_vm7, %v1135_v38, %v1134_v33  ;;  %v1003_v48 = vsel %vm290_vm8, %v1001_v37, %v1002_v45  ;;  %v444_v37 = vrot.slane %v428_v17, %v2132_v30  ;;  %v726_v38 = vrot.slane %v714_v36, %v2125_v19 }
 0x15c   :  { %v1005_v27 = vadd.f32 %v1003_v48, %v996_v46  ;;  %v1143_v40 = vpop.permute.xlu1 %1142  ;;  %892 = vrot.lane.b32.xlu0 %v883_v16, %s1499_s25  ;;  %v1138_v56 = vadd.f32 %v1136_v44, %v2062_v59  ;;  %v462_v59 = vrot.slane %v448_v6, %v1566_v2  ;;  %v891_v54 = vcombine.high %v883_v16, %v883_v16 }
 0x15d   :  { %v1144_v49 = vrot.slane %v1143_v40, 2  ;;  %v890_v10 = vrot.slane %v876_v51, %v1566_v2  ;;  %v586_v48 = vrot.slane %v570_v13, %v2132_v30  ;;  %v730_v6 = vrot.slane %v714_v36, %v2132_v30 }
 0x15e   :  { %v1025_v41 = vrot.slane %v1005_v27, %v1566_v2  ;;  %v1018_v63 = vcombine.high %v1005_v27, %v1005_v27  ;;  %v856_v27 = vld [vmem:[#allocation7 + $0x4] ss:$8 sm:$0x3] }
 0x15f   :  { %v1145_v5 = vsel %vm290_vm8, %v1143_v40, %v1144_v49  ;;  %v872_v3 = vrot.slane %v856_v27, %v2132_v30 }
 0x160   :  { %v1147_v28 = vadd.f32 %v1145_v5, %v1138_v56  ;;  %1034 = vrot.lane.b32.xlu1 %v1025_v41, %s1500_s26  ;;  %v1032_v42 = vrot.slane %v1018_v63, %v1566_v2  ;;  %v1033_v39 = vcombine.high %v1025_v41, %v1025_v41 }
 0x162   :  { %v1167_v57 = vrot.slane %v1147_v28, %v1566_v2  ;;  %v1160_v50 = vcombine.high %v1147_v28, %v1147_v28 }
 0x164   :  { %1176 = vrot.lane.b32.xlu0 %v1167_v57, %s1501_s0  ;;  %324 = vrot.lane.b32.xlu1 %v321_v58, %s1495_s13  ;;  %v1175_v18 = vcombine.high %v1167_v57, %v1167_v57  ;;  %v1174_v12 = vrot.slane %v1160_v50, %v1566_v2  ;;  %v285_v2 = vld [vmem:[#allocation7] ss:$8 sm:$0x3]  ;;  %v998_v58 = vld [vmem:[#allocation7 + $0x5] ss:$8 sm:$0x3] }
 0x165   :  { %v298_v26 = vrot.slane %v285_v2, %v2125_v19  ;;  %v302_v16 = vrot.slane %v285_v2, %v2132_v30 }
 0x168   :  { %468 = vrot.lane.b32.xlu1 %v462_v59, %s1496_s22  ;;  %326 = vrot.lane.b32.xlu0 %v320_v62, %s1495_s13  ;;  %v868_v59 = vrot.slane %v856_v27, %v2125_v19 }
 0x16c   :  { %608 = vrot.lane.b32.xlu1 %v605_v61, %s1497_s23  ;;  %466 = vrot.lane.b32.xlu0 %v463_v7, %s1496_s22 }
 0x170   :  { %754 = vrot.lane.b32.xlu1 %v748_v1, %s1498_s24  ;;  %610 = vrot.lane.b32.xlu0 %v604_v29, %s1497_s23 }
 0x174   :  { %894 = vrot.lane.b32.xlu1 %v891_v54, %s1499_s25  ;;  %752 = vrot.lane.b32.xlu0 %v749_v34, %s1498_s24  ;;  %v1140_v54 = vld [vmem:[#allocation7 + $0x6] ss:$8 sm:$0x3]  ;;  %v1010_v34 = vrot.slane %v998_v58, %v2125_v19 }
 0x178   :  { %1038 = vrot.lane.b32.xlu1 %v1032_v42, %s1500_s26  ;;  %896 = vrot.lane.b32.xlu0 %v890_v10, %s1499_s25  ;;  %v1014_v42 = vrot.slane %v998_v58, %v2132_v30  ;;  %v1205_v58 = vld [vmem:[#allocation3] sm:$0xff] }
 0x17c   :  { %1178 = vrot.lane.b32.xlu1 %v1175_v18, %s1501_s0  ;;  %1036 = vrot.lane.b32.xlu0 %v1033_v39, %s1500_s26 }
 0x180   :  { %1180 = vrot.lane.b32.xlu0 %v1174_v12, %s1501_s0 }
 0x1be   :  { %v323_v20 = vpop.permute.xlu0 %322 }
 0x1c2   :  { %v465_v11 = vpop.permute.xlu1 %464 }
 0x1c6   :  { %v607_v8 = vpop.permute.xlu0 %606 }
 0x1ca   :  { %v751_v14 = vpop.permute.xlu1 %750 }
 0x1ce   :  { %v893_v15 = vpop.permute.xlu0 %892 }
 0x1d2   :  { %v2120_v0 = vpop.permute.xlu1 %1034 }
 0x1d6   :  { %v2122_v47 = vpop.permute.xlu0 %1176  ;;  %v325_v53 = vpop.permute.xlu1 %324 }
 0x1d7   :  { %v329_v24 = vsel %vm328_vm10, %v323_v20, %v325_v53 }
 0x1d8   :  { %v333_v33 = vmul.f32 %v329_v24, %v298_v26 }
 0x1da   :  { %v469_v55 = vpop.permute.xlu1 %468  ;;  %v327_v35 = vpop.permute.xlu0 %326 }
 0x1db   :  { %v330_v56 = vsel %vm328_vm10, %v325_v53, %v327_v35  ;;  %v1156_v35 = vrot.slane %v1140_v54, %v2132_v30 }
 0x1dc   :  { %v334_v9 = vmul.f32 %v330_v56, %v302_v16 }
 0x1de   :  { %v609_v21 = vpop.permute.xlu1 %608  ;;  %v467_v23 = vpop.permute.xlu0 %466 }
 0x1df   :  { %v471_v22 = vsel %vm470_vm9, %v465_v11, %v467_v23  ;;  %v613_v45 = vsel %vm612_vm11, %v607_v8, %v609_v21  ;;  %v472_v46 = vsel %vm470_vm9, %v467_v23, %v469_v55  ;;  %v1152_v11 = vrot.slane %v1140_v54, %v2125_v19 }
 0x1e0   :  { %v475_v25 = vmul.f32 %v471_v22, %v440_v4  ;;  %v617_v28 = vmul.f32 %v613_v45, %v582_v43  ;;  %v476_v52 = vmul.f32 %v472_v46, %v444_v37  ;;  %v1502_v45 = vmov 1966171168  }
 0x1e1   :  { %v1211_v46 = vunpack.c.l.s4 %v1502_v45 }
 0x1e2   :  { %v755_v31 = vpop.permute.xlu1 %754  ;;  %v611_v32 = vpop.permute.xlu0 %610  ;;  %v477_v44 = vadd.f32 %v475_v25, %v333_v33  ;;  %v478_v10 = vadd.f32 %v476_v52, %v334_v9  ;;  %v1206_v9 = vld [vmem:[#allocation3 + $0x8] sm:$0xff] }
 0x1e3   :  { %v614_v41 = vsel %vm612_vm11, %v609_v21, %v611_v32  ;;  %v1212_v16 = vunpack.c.0.s8 %v1211_v46 }
 0x1e4   :  { %v618_v61 = vmul.f32 %v614_v41, %v586_v48  ;;  %v619_v7 = vadd.f32 %v617_v28, %v477_v44 }
 0x1e6   :  { %v895_v40 = vpop.permute.xlu1 %894  ;;  %v753_v49 = vpop.permute.xlu0 %752  ;;  %v620_v39 = vadd.f32 %v618_v61, %v478_v10 }
 0x1e7   :  { %v757_v5 = vsel %vm756_vm12, %v751_v14, %v753_v49  ;;  %v758_v62 = vsel %vm756_vm12, %v753_v49, %v755_v31  ;;  %v899_v51 = vsel %vm898_vm13, %v893_v15, %v895_v40  ;;  %v1215_v49 = vsub.s32 %v1212_v16, %v1555_v60 }
 0x1e8   :  { %v761_v57 = vmul.f32 %v757_v5, %v726_v38  ;;  %v762_v50 = vmul.f32 %v758_v62, %v730_v6  ;;  %v903_v12 = vmul.f32 %v899_v51, %v868_v59 }
 0x1ea   :  { %v1039_v1 = vpop.permute.xlu1 %1038  ;;  %v897_v29 = vpop.permute.xlu0 %896  ;;  %v763_v18 = vadd.f32 %v761_v57, %v619_v7  ;;  %v764_v17 = vadd.f32 %v762_v50, %v620_v39 }
 0x1eb   :  { %v900_v63 = vsel %vm898_vm13, %v895_v40, %v897_v29 }
 0x1ec   :  { %v904_v20 = vmul.f32 %v900_v63, %v872_v3  ;;  %v905_v2 = vadd.f32 %v903_v12, %v763_v18 }
 0x1ee   :  { %v1179_v8 = vpop.permute.xlu1 %1178  ;;  %v1037_v14 = vpop.permute.xlu0 %1036  ;;  %v906_v23 = vadd.f32 %v904_v20, %v764_v17 }
 0x1ef   :  { %v1183_v15 = vsel %vm1182_vm14, %v2122_v47, %v1179_v8  ;;  %v1041_v53 = vsel %vm1040_vm15, %v2120_v0, %v1037_v14  ;;  %v1042_v55 = vsel %vm1040_vm15, %v1037_v14, %v1039_v1 }
 0x1f0   :  { %v1045_v21 = vmul.f32 %v1041_v53, %v1010_v34  ;;  %v1046_v4 = vmul.f32 %v1042_v55, %v1014_v42  ;;  %v1187_v22 = vmul.f32 %v1183_v15, %v1152_v11 }
 0x1f2   :  { %v1047_v26 = vadd.f32 %v1045_v21, %v905_v2  ;;  %v1181_v13 = vpop.permute.xlu0 %1180  ;;  %v1048_v36 = vadd.f32 %v1046_v4, %v906_v23 }
 0x1f3   :  { %v1184_v24 = vsel %vm1182_vm14, %v1179_v8, %v1181_v13 }
 0x1f4   :  { %v1189_v25 = vadd.f32 %v1187_v22, %v1047_v26  ;;  %v1188_v31 = vmul.f32 %v1184_v24, %v1156_v35 }
 0x1f6   :  { %v1372_v32 = vmul.f32 -1.442695, %v1189_v25  ;;  %v1190_v47 = vadd.f32 %v1188_v31, %v1048_v36 }
 0x1f8   :  { %1396 = vpow2.f32 %v1372_v32  ;;  %v1373_v0 = vmul.f32 -1.442695, %v1190_v47 }
 0x1fa   :  { %1398 = vpow2.f32 %v1373_v0 }
 0x205   :  { %v1397_v43 = vpop.eup %1396 }
 0x206   :  { %v1197_v33 = vadd.f32 1.0, %v1397_v43 }
 0x207   :  { %v1399_v37 = vpop.eup %1398 }
 0x208   :  { %1400 = vrcp.f32 %v1197_v33  ;;  %v1198_v38 = vadd.f32 1.0, %v1399_v37 }
 0x20a   :  { %1402 = vrcp.f32 %v1198_v38 }
 0x215   :  { %v1401_v44 = vpop.eup %1400 }
 0x216   :  { %v1203_v40 = vadd.f32 1.0, %v1401_v44 }
 0x217   :  { %v1403_v48 = vpop.eup %1402 }
 0x218   :  { %v1204_v27 = vadd.f32 1.0, %v1403_v48 }
 0x21a   :  { %v1209_v56 = vcombine.low %v1203_v40, %v1204_v27 }
 0x21c   :  { %v1216_v41 = vrot.slane %v1209_v56, %v1215_v49 }
 0x21e   :  { %v1217_v5 = vcombine.high %v1216_v41, %v1216_v41  ;;  %v1224_v28 = vrot.slane %v1216_v41, %v1215_v49 }
 0x220   :  { %v1231_v52 = vrot.slane %v1217_v5, %v1215_v49  ;;  %v1235_v6 = vrot.slane %v1224_v28, %v2125_v19  ;;  %v1239_v57 = vrot.slane %v1224_v28, %v2132_v30 }
 0x222   :  { %v1243_v59 = vrot.slane %v1231_v52, %v2125_v19  ;;  %v1247_v62 = vrot.slane %v1231_v52, %v2132_v30  ;;  %v1248_v3 = vcombine.low %v1235_v6, %v1239_v57 }
 0x224   :  { %v1249_v61 = vcombine.low %v1243_v59, %v1247_v62  ;;  %v1252_v60 = vmul.f32 %v1248_v3, %v1205_v58 }
 0x226   :  { %v1253_v7 = vmul.f32 %v1249_v61, %v1206_v9  ;;  %1254 = vst [vmem:[#allocation10] sm:$0xff] %v1252_v60 }
 0x228   :  { %1255 = vst [vmem:[#allocation10 + $0x8] sm:$0xff] %v1253_v7 }
 0x229   :  { %1467 = shalt.err (!%p1464_p5)
}
 0x22a   :  { %1267 = dma.vmem_to_hbm [thread:$0]  %s1262_s1, 256, %s2172_s3, [#allocation5], %s1485_s15, %s1485_s15, %s1486_s16  }
 0x22b   :  { %1482 = dma.done.wait [#allocation5], 256  }
 0x22c   :  { %1483 = vsyncadd [#allocation5], 4294967040 }
 0x22d   :  { %1271 = vsyncpa [#allocation4], 1 }
 0x22e   :  { %1272 = vsyncpa [#allocation8], 1 }
 0x22f   :  { %1273 = vsyncpa [#allocation5], 1 }
 0x230   :  { %1274 = vsyncpa [#allocation6], 1 }

</bundles_post_ra>
